<compile_context>
chip_gen: v7x
topology: tpu7x:2x2x1
jax: 0.10.0
libtpu: 0.0.40
codegen_flags: <defaults>
</compile_context>

<pallas_src>
import jax
import jax.numpy as jnp
from jax.experimental import pallas as pl
from jax.experimental.pallas import tpu as pltpu

ARTICLE_PROJ = 1024  # hardcoded in the reference module (reshape to (1024, 1))
COMM_PROJ = 1024


# ----------------------------------------------------------------------------- #
# Pallas kernel: the full fused forward pass (single grid point, everything VMEM).
# ----------------------------------------------------------------------------- #
def _sage_gnn_kernel(
    art_ref,        # (1, F_art)    raw article features (single row)
    comm_row_ref,   # (1, F_comm)   raw community features, row form (lin2 input)
    comm_col_ref,   # (F_comm, 1)   raw community features, column form (conv3 root)
    w2t_ref,        # (F_comm, P)   lin2 weight, transposed
    b2_ref,         # (1, P)        lin2 bias (lane-dense row)
    wagg_ref,       # (F_art, 2P)   [ (A1@W1)^T | (A2@W1)^T ]  aggregated lin1 weights
    bagg_ref,       # (1, 2P)       [ (A1@b1)^T | (A2@b1)^T ]
    a3_ref,         # (1, P)        row-normalized mean adjacency for interacts_with
    wl1_ref, bl1_ref, wr1_ref,   # conv1: (H,1), (H,1), (H,1)
    wl2_ref, bl2_ref, wr2_ref,   # conv2: (H,1), (H,1), (H,H)
    wl3_ref, bl3_ref, wr3_ref,   # conv3: (H,H), (H,1), (H,F_comm)
    w3_ref, b3_ref,              # lin3:  (C,H), (C,1)
    out_ref,                     # (C, 1)  (wrapper transposes back to (1, C))
):
    dot = lambda a, b: jnp.dot(a, b, preferred_element_type=jnp.float32)
    P = a3_ref.shape[1]

    # lin2 projection, lane-dense: community_x^T as a (1, P) row.
    community = dot(comm_row_ref[...], w2t_ref[...]) + b2_ref[...]          # (1, P)

    # lin1 fused with both edge-mean aggregations (one MXU op, shared LHS):
    #   agg_k = A_k @ (W1 @ art^T + b1) == art @ (A_k @ W1)^T + (A_k @ b1)^T
    agg12 = dot(art_ref[...], wagg_ref[...]) + bagg_ref[...]                # (1, 2P)
    agg1 = agg12[:, :P]                                                     # (1, P)
    agg2 = agg12[:, P:]                                                     # (1, P)

    # conv1 (transposed, P on lane axis): h1^T = wl1*agg1 + bl1 + wr1*community
    h1t = jnp.maximum(
        wl1_ref[...] * agg1 + bl1_ref[...] + wr1_ref[...] * community, 0.0
    )                                                                       # (H, P)

    # conv2: h2^T = wl2*agg2 + bl2 + wr2 @ h1^T   (MXU: (H,H)@(H,1024))
    h2t = jnp.maximum(
        wl2_ref[...] * agg2 + bl2_ref[...] + dot(wr2_ref[...], h1t), 0.0
    )                                                                       # (H, P)

    # conv3 (single destination community node): agg3^T = h2^T @ a3^T  (lane reduce)
    agg3 = jnp.sum(h2t * a3_ref[...], axis=1, keepdims=True)                # (H, 1)
    h3 = jnp.maximum(
        dot(wl3_ref[...], agg3) + bl3_ref[...] + dot(wr3_ref[...], comm_col_ref[...]),
        0.0,
    )                                                                       # (H, 1)

    # lin3 (column form; tiny, transposed back to (1, C) in the wrapper).
    out_ref[...] = dot(w3_ref[...], h3) + b3_ref[...]                       # (C, 1)


# ----------------------------------------------------------------------------- #
# Glue (plain JAX)
# ----------------------------------------------------------------------------- #
def mean_adj(edge_index, n_dst, n_src):
    """Dense row-normalized mean-aggregation matrix (only used for the tiny (1,P)
    interacts_with adjacency and the pure-JAX reference)."""
    src, dst = edge_index[0], edge_index[1]
    a = jnp.zeros((n_dst, n_src), jnp.float32).at[dst, src].add(1.0)
    deg = jnp.sum(a, axis=1, keepdims=True)
    return a / jnp.maximum(deg, 1.0)   # zero-in-degree rows stay all-zero (PyG mean)


def _fold_mean_agg_into_lin(edge_index, w, b, n_dst):
    """Fold row-normalized mean aggregation A (n_dst x n_src) into a Linear layer.

    Returns (A @ W)^T of shape (in, n_dst) and (A @ b) of shape (1, n_dst), built
    with a gather + segment_sum (no dense (n_dst, n_src) matrix is materialized).
    """
    src, dst = edge_index[0], edge_index[1]
    ones = jnp.ones(src.shape, jnp.float32)
    deg = jax.ops.segment_sum(ones, dst, num_segments=n_dst)            # (n_dst,)
    inv = jnp.where(deg > 0, 1.0 / deg, 0.0)                            # zero-deg -> 0
    w_sum = jax.ops.segment_sum(w[src], dst, num_segments=n_dst)        # (n_dst, in)
    b_sum = jax.ops.segment_sum(b[src], dst, num_segments=n_dst)        # (n_dst,)
    return (w_sum * inv[:, None]).T, (b_sum * inv)[None, :]


# ----------------------------------------------------------------------------- #
# Parameter init (deterministic, Linear-style uniform(-1/sqrt(fan_in), ...)).
# ----------------------------------------------------------------------------- #
def init_params(key, f_art, f_comm, hidden, out_ch):
    ks = jax.random.split(key, 9)

    def lin(k, fan_in, fan_out, bias=True):
        kw, kb = jax.random.split(k)
        s = 1.0 / jnp.sqrt(jnp.float32(fan_in))
        w = jax.random.uniform(kw, (fan_out, fan_in), jnp.float32, -s, s)
        b = jax.random.uniform(kb, (fan_out,), jnp.float32, -s, s) if bias else None
        return w, b

    p = {}
    p["w1"], p["b1"] = lin(ks[0], f_art, ARTICLE_PROJ)        # lin1 (LazyLinear)
    p["w2"], p["b2"] = lin(ks[1], f_comm, COMM_PROJ)          # lin2 (LazyLinear)
    p["wl1"], p["bl1"] = lin(ks[2], 1, hidden)                # conv1.lin_l
    p["wr1"], _ = lin(ks[3], 1, hidden, bias=False)           # conv1.lin_r
    p["wl2"], p["bl2"] = lin(ks[4], 1, hidden)                # conv2.lin_l
    p["wr2"], _ = lin(ks[5], hidden, hidden, bias=False)      # conv2.lin_r
    p["wl3"], p["bl3"] = lin(ks[6], hidden, hidden)           # conv3.lin_l
    p["wr3"], _ = lin(ks[7], f_comm, hidden, bias=False)      # conv3.lin_r
    p["w3"], p["b3"] = lin(ks[8], hidden, out_ch)             # lin3
    return p


# ----------------------------------------------------------------------------- #
# Wrapper: folds edge aggregation into weights, lays everything out lane-dense,
# and calls the single fused kernel.
# ----------------------------------------------------------------------------- #
@jax.jit
def community_article_gnn_forward(params, article_x, community_x,
                                  ei_written, ei_mentioned, ei_interacts):
    H = params["wl1"].shape[0]
    out_ch = params["w3"].shape[0]
    # The reshape((1024, 1)) in the reference forces a single article row and a
    # single community row, so n_comm == 1 here.
    n_comm = community_x.shape[0]

    # Fold the written_by / mentioned_by mean aggregations into lin1 (exact algebra),
    # avoiding any dense (1024, 1024) adjacency matrix.  Fuse both into one matmul.
    w1a1_t, b1a1 = _fold_mean_agg_into_lin(ei_written, params["w1"], params["b1"], COMM_PROJ)
    w1a2_t, b1a2 = _fold_mean_agg_into_lin(ei_mentioned, params["w1"], params["b1"], COMM_PROJ)
    wagg = jnp.concatenate([w1a1_t, w1a2_t], axis=1)        # (F_art, 2P)
    bagg = jnp.concatenate([b1a1, b1a2], axis=1)            # (1, 2P)

    a3 = mean_adj(ei_interacts, n_comm, COMM_PROJ)          # (1, P), only 4 KB

    inputs = (
        article_x,                                   # (1, F_art)
        community_x,                                 # (1, F_comm)
        community_x.T,                               # (F_comm, 1)
        params["w2"].T, params["b2"][None, :],       # lin2 (lane-dense)
        wagg, bagg,
        a3,
        params["wl1"], params["bl1"].reshape(H, 1), params["wr1"],
        params["wl2"], params["bl2"].reshape(H, 1), params["wr2"],
        params["wl3"], params["bl3"].reshape(H, 1), params["wr3"],
        params["w3"], params["b3"].reshape(out_ch, 1),
    )

    vmem = pl.BlockSpec(memory_space=pltpu.MemorySpace.VMEM)
    out_col = pl.pallas_call(
        _sage_gnn_kernel,
        out_shape=jax.ShapeDtypeStruct((out_ch, 1), jnp.float32),
        in_specs=[vmem] * len(inputs),
        out_specs=vmem,
        # Footprint is < 1 MiB; 16 MiB limit is safe on v5e/v6e (128 MiB) and
        # v7x (64 MiB physical VMEM per TensorCore).
        compiler_params=pltpu.CompilerParams(vmem_limit_bytes=16 * 1024 * 1024),
    )(*inputs)
    return out_col.T                                 # (n_comm, C_out)


# ----------------------------------------------------------------------------- #
# Pure-JAX reference (mirrors PyG SAGEConv mean aggregation) for validation.
# ----------------------------------------------------------------------------- #
def reference_forward(params, article_x, community_x,
                      ei_written, ei_mentioned, ei_interacts):
    P = ARTICLE_PROJ
    ax = (article_x @ params["w1"].T + params["b1"]).reshape(P, 1)
    cx = (community_x @ params["w2"].T + params["b2"]).reshape(COMM_PROJ, 1)

    def sage(x_src, x_dst, ei, wl, bl, wr, n_dst):
        a = mean_adj(ei, n_dst, x_src.shape[0])
        return jax.nn.relu((a @ x_src) @ wl.T + bl + x_dst @ wr.T)

    h1 = sage(ax, cx, ei_written, params["wl1"], params["bl1"], params["wr1"], COMM_PROJ)
    h2 = sage(ax, h1, ei_mentioned, params["wl2"], params["bl2"], params["wr2"], COMM_PROJ)
    h3 = sage(h2, community_x, ei_interacts, params["wl3"], params["bl3"], params["wr3"],
              community_x.shape[0])
    return h3 @ params["w3"].T + params["b3"]


if __name__ == "__main__":
    key = jax.random.PRNGKey(0)
    k_art, k_comm, k_e1, k_e2, k_e3, k_params = jax.random.split(key, 6)

    # Small shapes implied by the forward pass: one article node, one community
    # node (the reshape to (1024, 1) requires a single input row per node type).
    F_ART, F_COMM, HIDDEN, OUT = 16, 16, 32, 16
    N_E1, N_E2, N_E3 = 4096, 4096, 512

    article_x = jax.random.normal(k_art, (1, F_ART), jnp.float32)
    community_x = jax.random.normal(k_comm, (1, F_COMM), jnp.float32)

    ei_written = jnp.stack([
        jax.random.randint(jax.random.fold_in(k_e1, 0), (N_E1,), 0, ARTICLE_PROJ),
        jax.random.randint(jax.random.fold_in(k_e1, 1), (N_E1,), 0, COMM_PROJ),
    ])
    ei_mentioned = jnp.stack([
        jax.random.randint(jax.random.fold_in(k_e2, 0), (N_E2,), 0, ARTICLE_PROJ),
        jax.random.randint(jax.random.fold_in(k_e2, 1), (N_E2,), 0, COMM_PROJ),
    ])
    ei_interacts = jnp.stack([
        jax.random.randint(jax.random.fold_in(k_e3, 0), (N_E3,), 0, COMM_PROJ),
        jnp.zeros((N_E3,), jnp.int32),   # single real community target node (index 0)
    ])

    params = init_params(k_params, F_ART, F_COMM, HIDDEN, OUT)

    out = community_article_gnn_forward(params, article_x, community_x,
                                        ei_written, ei_mentioned, ei_interacts)
    out = jax.block_until_ready(out)

    ref = reference_forward(params, article_x, community_x,
                            ei_written, ei_mentioned, ei_interacts)

    assert out.shape == (1, OUT), out.shape
    assert jnp.allclose(out, ref, atol=5e-4, rtol=5e-4), (out, ref)
    print("KERNEL_OK")
</pallas_src>

<mosaic_0001>
module attributes {stable_mosaic.version = 11 : i64} {
  func.func private @main(%arg0: i32) attributes {dimension_semantics = [#tpu.dimension_semantics<core_parallel>], iteration_bounds = array<i64: 2>, tpu.core_type = #tpu.core_type<sc_scalar_subcore>, window_params = []} {
    return
  }
}

module attributes {stable_mosaic.version = 11 : i64} {
  func.func private @main(%arg0: i32) attributes {dimension_semantics = [#tpu.dimension_semantics<core_parallel>], iteration_bounds = array<i64: 2>, tpu.core_type = #tpu.core_type<sc_scalar_subcore>, window_params = []} {
    return
  }
}

module attributes {stable_mosaic.version = 11 : i64} {
  func.func @_sage_gnn_kernel(%arg0: memref<1x16xf32, #tpu.memory_space<vmem>>, %arg1: memref<1x16xf32, #tpu.memory_space<vmem>>, %arg2: memref<16x1xf32, #tpu.memory_space<vmem>>, %arg3: memref<16x1024xf32, #tpu.memory_space<vmem>>, %arg4: memref<1x1024xf32, #tpu.memory_space<vmem>>, %arg5: memref<16x2048xf32, #tpu.memory_space<vmem>>, %arg6: memref<1x2048xf32, #tpu.memory_space<vmem>>, %arg7: memref<1x1024xf32, #tpu.memory_space<vmem>>, %arg8: memref<32x1xf32, #tpu.memory_space<vmem>>, %arg9: memref<32x1xf32, #tpu.memory_space<vmem>>, %arg10: memref<32x1xf32, #tpu.memory_space<vmem>>, %arg11: memref<32x1xf32, #tpu.memory_space<vmem>>, %arg12: memref<32x1xf32, #tpu.memory_space<vmem>>, %arg13: memref<32x32xf32, #tpu.memory_space<vmem>>, %arg14: memref<32x32xf32, #tpu.memory_space<vmem>>, %arg15: memref<32x1xf32, #tpu.memory_space<vmem>>, %arg16: memref<32x16xf32, #tpu.memory_space<vmem>>, %arg17: memref<16x32xf32, #tpu.memory_space<vmem>>, %arg18: memref<16x1xf32, #tpu.memory_space<vmem>>, %arg19: memref<16x1xf32, #tpu.memory_space<vmem>>) attributes {dimension_semantics = [], scalar_prefetch = 0 : i64, scratch_operands = 0 : i64, tpu.core_type = #tpu.core_type<tc>} {
    %c0 = arith.constant 0 : index
    %c0_0 = arith.constant 0 : index
    %0 = vector.load %arg1[%c0, %c0_0] : memref<1x16xf32, #tpu.memory_space<vmem>>, vector<1x16xf32>
    %c0_1 = arith.constant 0 : index
    %c0_2 = arith.constant 0 : index
    %1 = vector.load %arg3[%c0_1, %c0_2] : memref<16x1024xf32, #tpu.memory_space<vmem>>, vector<16x1024xf32>
    %cst = arith.constant dense<0.000000e+00> : vector<1x1024xf32>
    %2 = tpu.matmul %0, %1, %cst {dimension_numbers = #tpu.dot_dimension_numbers<[1], [0], [0], [1], [0, 0, 1, 1], [], []>} : vector<1x16xf32>, vector<16x1024xf32>, vector<1x1024xf32> -> vector<1x1024xf32>
    %c0_3 = arith.constant 0 : index
    %c0_4 = arith.constant 0 : index
    %3 = vector.load %arg4[%c0_3, %c0_4] : memref<1x1024xf32, #tpu.memory_space<vmem>>, vector<1x1024xf32>
    %4 = arith.addf %2, %3 : vector<1x1024xf32>
    %c0_5 = arith.constant 0 : index
    %c0_6 = arith.constant 0 : index
    %5 = vector.load %arg0[%c0_5, %c0_6] : memref<1x16xf32, #tpu.memory_space<vmem>>, vector<1x16xf32>
    %c0_7 = arith.constant 0 : index
    %c0_8 = arith.constant 0 : index
    %6 = vector.load %arg5[%c0_7, %c0_8] : memref<16x2048xf32, #tpu.memory_space<vmem>>, vector<16x2048xf32>
    %cst_9 = arith.constant dense<0.000000e+00> : vector<1x2048xf32>
    %7 = tpu.matmul %5, %6, %cst_9 {dimension_numbers = #tpu.dot_dimension_numbers<[1], [0], [0], [1], [0, 0, 1, 1], [], []>} : vector<1x16xf32>, vector<16x2048xf32>, vector<1x2048xf32> -> vector<1x2048xf32>
    %c0_10 = arith.constant 0 : index
    %c0_11 = arith.constant 0 : index
    %8 = vector.load %arg6[%c0_10, %c0_11] : memref<1x2048xf32, #tpu.memory_space<vmem>>, vector<1x2048xf32>
    %9 = arith.addf %7, %8 : vector<1x2048xf32>
    %10 = vector.extract_strided_slice %9 {offsets = [0, 0], sizes = [1, 1024], strides = [1, 1]} : vector<1x2048xf32> to vector<1x1024xf32>
    %11 = vector.extract_strided_slice %9 {offsets = [0, 1024], sizes = [1, 1024], strides = [1, 1]} : vector<1x2048xf32> to vector<1x1024xf32>
    %c0_12 = arith.constant 0 : index
    %c0_13 = arith.constant 0 : index
    %12 = vector.load %arg8[%c0_12, %c0_13] : memref<32x1xf32, #tpu.memory_space<vmem>>, vector<32x1xf32>
    %13 = vector.broadcast %12 : vector<32x1xf32> to vector<32x1024xf32>
    %14 = vector.broadcast %10 : vector<1x1024xf32> to vector<32x1024xf32>
    %15 = arith.mulf %13, %14 : vector<32x1024xf32>
    %c0_14 = arith.constant 0 : index
    %c0_15 = arith.constant 0 : index
    %16 = vector.load %arg9[%c0_14, %c0_15] : memref<32x1xf32, #tpu.memory_space<vmem>>, vector<32x1xf32>
    %17 = vector.broadcast %16 : vector<32x1xf32> to vector<32x1024xf32>
    %18 = arith.addf %15, %17 : vector<32x1024xf32>
    %c0_16 = arith.constant 0 : index
    %c0_17 = arith.constant 0 : index
    %19 = vector.load %arg10[%c0_16, %c0_17] : memref<32x1xf32, #tpu.memory_space<vmem>>, vector<32x1xf32>
    %20 = vector.broadcast %19 : vector<32x1xf32> to vector<32x1024xf32>
    %21 = vector.broadcast %4 : vector<1x1024xf32> to vector<32x1024xf32>
    %22 = arith.mulf %20, %21 : vector<32x1024xf32>
    %23 = arith.addf %18, %22 : vector<32x1024xf32>
    %cst_18 = arith.constant 0.000000e+00 : f32
    %24 = vector.broadcast %cst_18 : f32 to vector<32x1024xf32>
    %25 = arith.maximumf %23, %24 : vector<32x1024xf32>
    %c0_19 = arith.constant 0 : index
    %c0_20 = arith.constant 0 : index
    %26 = vector.load %arg11[%c0_19, %c0_20] : memref<32x1xf32, #tpu.memory_space<vmem>>, vector<32x1xf32>
    %27 = vector.broadcast %26 : vector<32x1xf32> to vector<32x1024xf32>
    %28 = vector.broadcast %11 : vector<1x1024xf32> to vector<32x1024xf32>
    %29 = arith.mulf %27, %28 : vector<32x1024xf32>
    %c0_21 = arith.constant 0 : index
    %c0_22 = arith.constant 0 : index
    %30 = vector.load %arg12[%c0_21, %c0_22] : memref<32x1xf32, #tpu.memory_space<vmem>>, vector<32x1xf32>
    %31 = vector.broadcast %30 : vector<32x1xf32> to vector<32x1024xf32>
    %32 = arith.addf %29, %31 : vector<32x1024xf32>
    %c0_23 = arith.constant 0 : index
    %c0_24 = arith.constant 0 : index
    %33 = vector.load %arg13[%c0_23, %c0_24] : memref<32x32xf32, #tpu.memory_space<vmem>>, vector<32x32xf32>
    %cst_25 = arith.constant dense<0.000000e+00> : vector<32x1024xf32>
    %34 = tpu.matmul %33, %25, %cst_25 {dimension_numbers = #tpu.dot_dimension_numbers<[1], [0], [0], [1], [0, 0, 1, 1], [], []>} : vector<32x32xf32>, vector<32x1024xf32>, vector<32x1024xf32> -> vector<32x1024xf32>
    %35 = arith.addf %32, %34 : vector<32x1024xf32>
    %cst_26 = arith.constant 0.000000e+00 : f32
    %36 = vector.broadcast %cst_26 : f32 to vector<32x1024xf32>
    %37 = arith.maximumf %35, %36 : vector<32x1024xf32>
    %c0_27 = arith.constant 0 : index
    %c0_28 = arith.constant 0 : index
    %38 = vector.load %arg7[%c0_27, %c0_28] : memref<1x1024xf32, #tpu.memory_space<vmem>>, vector<1x1024xf32>
    %39 = vector.broadcast %38 : vector<1x1024xf32> to vector<32x1024xf32>
    %40 = arith.mulf %37, %39 : vector<32x1024xf32>
    %cst_29 = arith.constant dense<0.000000e+00> : vector<32xf32>
    %41 = vector.multi_reduction <add>, %40, %cst_29 [1] : vector<32x1024xf32> to vector<32xf32>
    %42 = vector.shape_cast %41 : vector<32xf32> to vector<32x1xf32>
    %c0_30 = arith.constant 0 : index
    %c0_31 = arith.constant 0 : index
    %43 = vector.load %arg14[%c0_30, %c0_31] : memref<32x32xf32, #tpu.memory_space<vmem>>, vector<32x32xf32>
    %cst_32 = arith.constant dense<0.000000e+00> : vector<32x1xf32>
    %44 = tpu.matmul %43, %42, %cst_32 {dimension_numbers = #tpu.dot_dimension_numbers<[1], [0], [0], [1], [0, 0, 1, 1], [], []>} : vector<32x32xf32>, vector<32x1xf32>, vector<32x1xf32> -> vector<32x1xf32>
    %c0_33 = arith.constant 0 : index
    %c0_34 = arith.constant 0 : index
    %45 = vector.load %arg15[%c0_33, %c0_34] : memref<32x1xf32, #tpu.memory_space<vmem>>, vector<32x1xf32>
    %46 = arith.addf %44, %45 : vector<32x1xf32>
    %c0_35 = arith.constant 0 : index
    %c0_36 = arith.constant 0 : index
    %47 = vector.load %arg16[%c0_35, %c0_36] : memref<32x16xf32, #tpu.memory_space<vmem>>, vector<32x16xf32>
    %c0_37 = arith.constant 0 : index
    %c0_38 = arith.constant 0 : index
    %48 = vector.load %arg2[%c0_37, %c0_38] : memref<16x1xf32, #tpu.memory_space<vmem>>, vector<16x1xf32>
    %cst_39 = arith.constant dense<0.000000e+00> : vector<32x1xf32>
    %49 = tpu.matmul %47, %48, %cst_39 {dimension_numbers = #tpu.dot_dimension_numbers<[1], [0], [0], [1], [0, 0, 1, 1], [], []>} : vector<32x16xf32>, vector<16x1xf32>, vector<32x1xf32> -> vector<32x1xf32>
    %50 = arith.addf %46, %49 : vector<32x1xf32>
    %cst_40 = arith.constant 0.000000e+00 : f32
    %51 = vector.broadcast %cst_40 : f32 to vector<32x1xf32>
    %52 = arith.maximumf %50, %51 : vector<32x1xf32>
    %c0_41 = arith.constant 0 : index
    %c0_42 = arith.constant 0 : index
    %53 = vector.load %arg17[%c0_41, %c0_42] : memref<16x32xf32, #tpu.memory_space<vmem>>, vector<16x32xf32>
    %cst_43 = arith.constant dense<0.000000e+00> : vector<16x1xf32>
    %54 = tpu.matmul %53, %52, %cst_43 {dimension_numbers = #tpu.dot_dimension_numbers<[1], [0], [0], [1], [0, 0, 1, 1], [], []>} : vector<16x32xf32>, vector<32x1xf32>, vector<16x1xf32> -> vector<16x1xf32>
    %c0_44 = arith.constant 0 : index
    %c0_45 = arith.constant 0 : index
    %55 = vector.load %arg18[%c0_44, %c0_45] : memref<16x1xf32, #tpu.memory_space<vmem>>, vector<16x1xf32>
    %56 = arith.addf %54, %55 : vector<16x1xf32>
    %c0_46 = arith.constant 0 : index
    %c0_47 = arith.constant 0 : index
    %57 = vector.load %arg19[%c0_46, %c0_47] : memref<16x1xf32, #tpu.memory_space<vmem>>, vector<16x1xf32>
    tpu.vector_store %arg19[%c0_46, %c0_47], %56 {strides = array<i32>} : memref<16x1xf32, #tpu.memory_space<vmem>>, vector<16x1xf32>,
    return
  }
}

</mosaic_0001>

<bundles_post_ra>
// kernel: community_article_gnn_forward.1
= control target key start
LH: loop header
LB: loop body
LE: loop exit
PB: predicated region body
PF: predicated region fallthrough
CT: control target
= control target key end

     0   :  { %v3751_v3 = vmov 0.0   ;;  %v2598_v8 = vmov 0   ;;  %vm121_vm0 = vcmask 130048   ;;  %vm1541_vm1 = vcmask 261120   ;;  %s3729_s3 = inlined_call_operand.vmem [shape: f32[16,1024], index: 3, kind: input, shape index: {}]   ;;  %s3730_s1 = inlined_call_operand.vmem [shape: f32[1,16], index: 1, kind: input, shape index: {}]   ;;  %s3731_s5 = inlined_call_operand.vmem [shape: f32[16,2048], index: 5, kind: input, shape index: {}]   ;;  %s3732_s0 = inlined_call_operand.vmem [shape: f32[1,16], index: 0, kind: input, shape index: {}]   ;;  %s3733_s9 = inlined_call_operand.vmem [shape: f32[32,1], index: 9, kind: input, shape index: {}]   ;;  %s3734_s8 = inlined_call_operand.vmem [shape: f32[32,1], index: 8, kind: input, shape index: {}]   ;;  %s3735_s10 = inlined_call_operand.vmem [shape: f32[32,1], index: 10, kind: input, shape index: {}]   ;;  %s3736_s11 = inlined_call_operand.vmem [shape: f32[32,1], index: 11, kind: input, shape index: {}]   ;;  %s3737_s12 = inlined_call_operand.vmem [shape: f32[32,1], index: 12, kind: input, shape index: {}]   ;;  %s3738_s4 = inlined_call_operand.vmem [shape: f32[1,1024], index: 4, kind: input, shape index: {}]   ;;  %s3739_s6 = inlined_call_operand.vmem [shape: f32[1,2048], index: 6, kind: input, shape index: {}]   ;;  %s3740_s13 = inlined_call_operand.vmem [shape: f32[32,32], index: 13, kind: input, shape index: {}]   ;;  %s3741_s7 = inlined_call_operand.vmem [shape: f32[1,1024], index: 7, kind: input, shape index: {}]   ;;  %s3742_s14 = inlined_call_operand.vmem [shape: f32[32,32], index: 14, kind: input, shape index: {}]   ;;  %s3743_s2 = inlined_call_operand.vmem [shape: f32[16,1], index: 2, kind: input, shape index: {}]   ;;  %s3744_s16 = inlined_call_operand.vmem [shape: f32[32,16], index: 16, kind: input, shape index: {}]   ;;  %s3745_s17 = inlined_call_operand.vmem [shape: f32[16,32], index: 17, kind: input, shape index: {}]   ;;  %s3746_s15 = inlined_call_operand.vmem [shape: f32[32,1], index: 15, kind: input, shape index: {}]   ;;  %s3747_s18 = inlined_call_operand.vmem [shape: f32[16,1], index: 18, kind: input, shape index: {}]   ;;  %s3748_s19 = inlined_call_operand.vmem [shape: f32[16,1], index: 19, kind: output, shape index: {}]  }
   0x1   :  { %3761 = sst [smem:[#allocation21_spill]] %s3729_s3  ;;  %189 = vmatprep.mubr.f32.mxu1 %v3751_v3  ;;  %331 = vmatprep.mubr.f32.mxu0 %v3751_v3  ;;  %vm2385_vm2 = vcmask 7168  }
   0x2   :  { %3762 = sst [smem:[#allocation22_spill]] %s3730_s1  ;;  %s3765_s20 = sld [smem:[#allocation21_spill]]  ;;  %2596 = vset.pattern.permute.xlu1 %v2598_v8  ;;  %2595 = vset.pattern.permute.xlu0 %v2598_v8 }
   0x3   :  { %3763 = sst [smem:[#allocation23_spill]] %s3731_s5  ;;  %s3766_s22 = sld [smem:[#allocation22_spill]] }
   0x4   :  { %3764 = sst [smem:[#allocation24_spill]] %s3732_s0  ;;  %s3767_s27 = sld [smem:[#allocation23_spill]] }
   0x5   :  { %s3768_s1 = sld [smem:[#allocation24_spill]] }
   0x8   :  { %v64_v0 = vld [vmem:[%s3765_s20 + $0x8] sm:$0xff]  ;;  %v63_v6 = vld [vmem:[%s3765_s20] sm:$0xff]  ;;  %v66_v15 = vld [vmem:[%s3765_s20 + $0x18] sm:$0xff] }
   0x9   :  { %v72_v1 = vld [vmem:[%s3765_s20 + $0x48] sm:$0xff]  ;;  %v71_v7 = vld [vmem:[%s3765_s20 + $0x40] sm:$0xff]  ;;  %v74_v16 = vld [vmem:[%s3765_s20 + $0x58] sm:$0xff] }
   0xa   :  { %v68_v2 = vld [vmem:[%s3765_s20 + $0x28] sm:$0xff]  ;;  %v2485_v4 = vpack.c.bf16 %v72_v1, %v64_v0  ;;  %v2487_v10 = vpack.c.bf16 %v71_v7, %v63_v6  ;;  %v67_v11 = vld [vmem:[%s3765_s20 + $0x20] sm:$0xff]  ;;  %v2489_v18 = vpack.c.bf16 %v74_v16, %v66_v15  ;;  %v65_v20 = vld [vmem:[%s3765_s20 + $0x10] sm:$0xff] }
   0xb   :  { %v76_v5 = vld [vmem:[%s3765_s20 + $0x68] sm:$0xff]  ;;  %v75_v12 = vld [vmem:[%s3765_s20 + $0x60] sm:$0xff]  ;;  %v73_v21 = vld [vmem:[%s3765_s20 + $0x50] sm:$0xff] }
   0xc   :  { %v2493_v9 = vpack.c.bf16 %v76_v5, %v68_v2  ;;  %v2728_v13 = vld [vmem:[%s3766_s22] sm:$0x1]  ;;  %2486 = vmatprep.subr.bf16.mxu1 %v2485_v4  ;;  %v2495_v14 = vpack.c.bf16 %v75_v12, %v67_v11  ;;  %v411_v17 = vld [vmem:[%s3767_s27 + $0x8] sm:$0xff]  ;;  %v2491_v23 = vpack.c.bf16 %v73_v21, %v65_v20  ;;  %v70_v26 = vld [vmem:[%s3765_s20 + $0x38] sm:$0xff] }
   0xd   :  { %2488 = vmatpush1.bf16.msra.mxu1 %v2487_v10  ;;  %v427_v19 = vld [vmem:[%s3767_s27 + $0x88] sm:$0xff]  ;;  %v410_v24 = vld [vmem:[%s3767_s27] sm:$0xff]  ;;  %v78_v28 = vld [vmem:[%s3765_s20 + $0x78] sm:$0xff] }
   0xe   :  { %2494 = vmatprep.subr.bf16.mxu0 %v2493_v9  ;;  %v2501_v22 = vpack.c.bf16 %v427_v19, %v411_v17  ;;  %v426_v25 = vld [vmem:[%s3767_s27 + $0x80] sm:$0xff]  ;;  %2490 = vmatprep.subr.bf16.mxu1 %v2489_v18  ;;  %v415_v29 = vld [vmem:[%s3767_s27 + $0x28] sm:$0xff]  ;;  %v2497_v30 = vpack.c.bf16 %v78_v28, %v70_v26  ;;  %v69_v33 = vld [vmem:[%s3765_s20 + $0x30] sm:$0xff] }
   0xf   :  { %2496 = vmatpush1.bf16.msra.mxu0 %v2495_v14  ;;  %v2503_v27 = vpack.c.bf16 %v426_v25, %v410_v24  ;;  %v2768_v31 = vld [vmem:[%s3768_s1] sm:$0x1]  ;;  %v431_v32 = vld [vmem:[%s3767_s27 + $0xa8] sm:$0xff]  ;;  %v77_v34 = vld [vmem:[%s3765_s20 + $0x70] sm:$0xff] }
  0x10   :  { %2392 = vmatmul.mubr.msk.f32.vlgmr.msra.gmra.mrb[0].mxu1 %vm121_vm0, %v2728_v13  ;;  %2502 = vmatprep.subr.bf16.mxu0 %v2501_v22  ;;  %v2509_v35 = vpack.c.bf16 %v431_v32, %v415_v29  ;;  %v2499_v36 = vpack.c.bf16 %v77_v34, %v69_v33  ;;  %v414_v37 = vld [vmem:[%s3767_s27 + $0x20] sm:$0xff]  ;;  %v413_v39 = vld [vmem:[%s3767_s27 + $0x18] sm:$0xff]  ;;  %v419_v42 = vld [vmem:[%s3767_s27 + $0x48] sm:$0xff] }
  0x11   :  { %2492 = vmatpush1.bf16.msra.mxu1 %v2491_v23  ;;  %v430_v38 = vld [vmem:[%s3767_s27 + $0xa0] sm:$0xff]  ;;  %260 = vmatprep.mubr.f32.mxu1 %v3751_v3  ;;  %v429_v41 = vld [vmem:[%s3767_s27 + $0x98] sm:$0xff]  ;;  %v435_v43 = vld [vmem:[%s3767_s27 + $0xc8] sm:$0xff] }
  0x12   :  { %2394 = vmatmul.mubr.msk.f32.vlgmr.msra.gmra.mrb[0].mxu0 %vm121_vm0, %v2728_v13  ;;  %v2511_v40 = vpack.c.bf16 %v430_v38, %v414_v37  ;;  %2498 = vmatprep.subr.bf16.mxu1 %v2497_v30  ;;  %v2505_v44 = vpack.c.bf16 %v429_v41, %v413_v39  ;;  %v412_v45 = vld [vmem:[%s3767_s27 + $0x10] sm:$0xff]  ;;  %v418_v47 = vld [vmem:[%s3767_s27 + $0x40] sm:$0xff]  ;;  %v2517_v48 = vpack.c.bf16 %v435_v43, %v419_v42  ;;  %v417_v50 = vld [vmem:[%s3767_s27 + $0x38] sm:$0xff]  ;;  %v81_v37 = vlaneseq }
  0x13   :  { %2504 = vmatpush1.bf16.msra.mxu0 %v2503_v27  ;;  %593 = vmatprep.mubr.f32.mxu0 %v3751_v3  ;;  %v428_v46 = vld [vmem:[%s3767_s27 + $0x90] sm:$0xff]  ;;  %v434_v49 = vld [vmem:[%s3767_s27 + $0xc0] sm:$0xff]  ;;  %v433_v51 = vld [vmem:[%s3767_s27 + $0xb8] sm:$0xff] }
  0x14   :  { %2393 = vmatmul.mubr.msk.f32.vlgmr.msra.gmra.mrb[2].mxu1 %vm121_vm0, %v2728_v13  ;;  %2510 = vmatprep.subr.bf16.mxu0 %v2509_v35  ;;  %v2507_v52 = vpack.c.bf16 %v428_v46, %v412_v45  ;;  %v423_v53 = vld [vmem:[%s3767_s27 + $0x68] sm:$0xff]  ;;  %v2519_v55 = vpack.c.bf16 %v434_v49, %v418_v47  ;;  %v416_v56 = vld [vmem:[%s3767_s27 + $0x30] sm:$0xff]  ;;  %v2513_v58 = vpack.c.bf16 %v433_v51, %v417_v50  ;;  %v422_v59 = vld [vmem:[%s3767_s27 + $0x60] sm:$0xff]  ;;  %v82_v39 = vshrl.u32 %v81_v37, 7 }
  0x15   :  { %2500 = vmatpush1.bf16.msra.mxu1 %v2499_v36  ;;  %v439_v54 = vld [vmem:[%s3767_s27 + $0xe8] sm:$0xff]  ;;  %402 = vmatprep.mubr.f32.mxu1 %v3751_v3  ;;  %v432_v57 = vld [vmem:[%s3767_s27 + $0xb0] sm:$0xff]  ;;  %v438_v60 = vld [vmem:[%s3767_s27 + $0xe0] sm:$0xff] }
  0x16   :  { %2396 = vmatmul.mubr.msk.f32.vlgmr.msra.gmra.mrb[2].mxu0 %vm121_vm0, %v2768_v31  ;;  %2506 = vmatprep.subr.bf16.mxu1 %v2505_v44  ;;  %v2525_v61 = vpack.c.bf16 %v439_v54, %v423_v53  ;;  %v421_v62 = vld [vmem:[%s3767_s27 + $0x58] sm:$0xff]  ;;  %v2515_v0 = vpack.c.bf16 %v432_v57, %v416_v56  ;;  %v2527_v1 = vpack.c.bf16 %v438_v60, %v422_v59  ;;  %v420_v2 = vld [vmem:[%s3767_s27 + $0x50] sm:$0xff]  ;;  %v1185_v9 = vld [vmem:[%s3733_s9] sm:$0xff]  ;;  %v2963_v41 = vsub.s32 0, %v82_v39 }
  0x17   :  { %2512 = vmatpush1.bf16.msra.mxu0 %v2511_v40  ;;  %735 = vmatprep.mubr.f32.mxu0 %v3751_v3  ;;  %v437_v63 = vld [vmem:[%s3767_s27 + $0xd8] sm:$0xff]  ;;  %v436_v4 = vld [vmem:[%s3767_s27 + $0xd0] sm:$0xff]  ;;  %v1186_v15 = vld [vmem:[%s3733_s9 + $0x8] sm:$0xff]  ;;  %v2972_v44 = vsub.s32 4, %v82_v39  ;;  %v2974_v45 = vsub.s32 1, %v82_v39  ;;  %v2978_v47 = vsub.s32 5, %v82_v39 }
  0x18   :  { %2395 = vmatmul.mubr.msk.f32.vlgmr.msra.gmra.mrb[4].mxu1 %vm121_vm0, %v2728_v13  ;;  %2518 = vmatprep.subr.bf16.mxu0 %v2517_v48  ;;  %v2521_v5 = vpack.c.bf16 %v437_v63, %v421_v62  ;;  %v425_v6 = vld [vmem:[%s3767_s27 + $0x78] sm:$0xff]  ;;  %v2523_v8 = vpack.c.bf16 %v436_v4, %v420_v2  ;;  %v424_v11 = vld [vmem:[%s3767_s27 + $0x70] sm:$0xff]  ;;  %v1097_v13 = vld [vmem:[%s3734_s8] sm:$0xff]  ;;  %v2980_v48 = vsub.s32 2, %v82_v39  ;;  %v2989_v51 = vsub.s32 3, %v82_v39 }
  0x19   :  { %2508 = vmatpush1.bf16.msra.mxu1 %v2507_v52  ;;  %664 = vmatprep.mubr.f32.mxu1 %v3751_v3  ;;  %v441_v7 = vld [vmem:[%s3767_s27 + $0xf8] sm:$0xff]  ;;  %v440_v12 = vld [vmem:[%s3767_s27 + $0xf0] sm:$0xff]  ;;  %v1098_v16 = vld [vmem:[%s3734_s8 + $0x8] sm:$0xff]  ;;  %3769 = vst [vmem:[#allocation2_spill] sm:$0xff] %v2972_v44  ;;  %v2991_v52 = vsub.s32 6, %v82_v39  ;;  %v2995_v54 = vsub.s32 7, %v82_v39 }
  0x1a   :  { %2398 = vmatmul.mubr.msk.f32.vlgmr.msra.gmra.mrb[4].mxu0 %vm121_vm0, %v2768_v31  ;;  %2514 = vmatprep.subr.bf16.mxu1 %v2513_v58  ;;  %v2529_v10 = vpack.c.bf16 %v441_v7, %v425_v6  ;;  %v2531_v14 = vpack.c.bf16 %v440_v12, %v424_v11  ;;  %v1242_v17 = vld [vmem:[%s3735_s10 + $0x8] sm:$0xff]  ;;  %v1241_v18 = vld [vmem:[%s3735_s10] sm:$0xff]  ;;  %v1100_v19 = vld [vmem:[%s3734_s8 + $0x18] sm:$0xff]  ;;  %3770 = vst [vmem:[#allocation3_spill] sm:$0xff] %v2974_v45 }
  0x1b   :  { %2520 = vmatpush1.bf16.msra.mxu0 %v2519_v55  ;;  %877 = vmatprep.mubr.f32.mxu0 %v3751_v3  ;;  %v1099_v20 = vld [vmem:[%s3734_s8 + $0x10] sm:$0xff]  ;;  %v1188_v21 = vld [vmem:[%s3733_s9 + $0x18] sm:$0xff]  ;;  %v1394_v25 = vld [vmem:[%s3736_s11 + $0x8] sm:$0xff]  ;;  %3771 = vst [vmem:[#allocation4_spill] sm:$0xff] %v2978_v47 }
  0x1c   :  { %2397 = vmatmul.mubr.msk.f32.vlgmr.msra.gmra.mrb[6].mxu1 %vm121_vm0, %v2768_v31  ;;  %2526 = vmatprep.subr.bf16.mxu0 %v2525_v61  ;;  %v1187_v22 = vld [vmem:[%s3733_s9 + $0x10] sm:$0xff]  ;;  %v1244_v23 = vld [vmem:[%s3735_s10 + $0x18] sm:$0xff]  ;;  %v1393_v26 = vld [vmem:[%s3736_s11] sm:$0xff]  ;;  %3772 = vst [vmem:[#allocation5_spill] sm:$0xff] %v2980_v48 }
  0x1d   :  { %2516 = vmatpush1.bf16.msra.mxu1 %v2515_v0  ;;  %806 = vmatprep.mubr.f32.mxu1 %v3751_v3  ;;  %v1243_v24 = vld [vmem:[%s3735_s10 + $0x10] sm:$0xff]  ;;  %v1482_v27 = vld [vmem:[%s3737_s12 + $0x8] sm:$0xff]  ;;  %v1481_v28 = vld [vmem:[%s3737_s12] sm:$0xff]  ;;  %3773 = vst [vmem:[#allocation6_spill] sm:$0xff] %v2989_v51 }
  0x1e   :  { %2400 = vmatmul.mubr.msk.f32.vlgmr.msra.gmra.mrb[6].mxu0 %vm121_vm0, %v2768_v31  ;;  %2522 = vmatprep.subr.bf16.mxu1 %v2521_v5  ;;  %v1396_v29 = vld [vmem:[%s3736_s11 + $0x18] sm:$0xff]  ;;  %v1395_v30 = vld [vmem:[%s3736_s11 + $0x10] sm:$0xff]  ;;  %v2970_v43 = vld [vmem:[%s3738_s4] sm:$0xff]  ;;  %3774 = vst [vmem:[#allocation7_spill] sm:$0xff] %v2991_v52 }
  0x1f   :  { %2528 = vmatpush1.bf16.msra.mxu0 %v2527_v1  ;;  %1019 = vmatprep.mubr.f32.mxu0 %v3751_v3  ;;  %v1483_v32 = vld [vmem:[%s3737_s12 + $0x10] sm:$0xff]  ;;  %v84_v49 = vrot.slane %v2970_v43, %v2963_v41  ;;  %v2987_v50 = vld [vmem:[%s3739_s6] sm:$0xff]  ;;  %v100_v53 = vrot.slane %v2970_v43, %v2972_v44  ;;  %v88_v55 = vrot.slane %v2970_v43, %v2974_v45  ;;  %v3010_v61 = vld [vmem:[%s3739_s6 + $0x8] sm:$0xff] }
  0x20   :  { %2399 = vmatmul.mubr.msk.f32.vlgmr.msra.gmra.mrb[8].mxu1 %vm121_vm0, %v2768_v31  ;;  %1191 = vperm.xlu1 %2596, %v1185_v9   ;;  %v104_v58 = vrot.slane %v2970_v43, %v2978_v47  ;;  %v92_v59 = vrot.slane %v2970_v43, %v2980_v48  ;;  %v449_v60 = vrot.slane %v2987_v50, %v2963_v41 }
  0x21   :  { %2524 = vmatpush1.bf16.msra.mxu1 %v2523_v8  ;;  %948 = vmatprep.mubr.f32.mxu1 %v3751_v3  ;;  %v96_v1 = vrot.slane %v2970_v43, %v2989_v51  ;;  %v453_v2 = vrot.slane %v2987_v50, %v2974_v45  ;;  %v108_v4 = vrot.slane %v2970_v43, %v2991_v52 }
  0x22   :  { %2402 = vmatmul.mubr.msk.f32.vlgmr.msra.gmra.mrb[8].mxu0 %vm121_vm0, %v2768_v31  ;;  %2530 = vmatprep.subr.bf16.mxu1 %v2529_v10  ;;  %v465_v8 = vrot.slane %v2987_v50, %v2972_v44  ;;  %v112_v9 = vrot.slane %v2970_v43, %v2995_v54  ;;  %v469_v10 = vrot.slane %v2987_v50, %v2978_v47 }
  0x23   :  { %1103 = vperm.xlu0 %2595, %v1097_v13   ;;  %1618 = vmatprep.mubr.f32.mxu0 %v3751_v3  ;;  %v457_v13 = vrot.slane %v2987_v50, %v2980_v48 }
  0x24   :  { %2401 = vmatmul.mubr.msk.f32.vlgmr.msra.gmra.mrb[10].mxu1 %vm121_vm0, %v2768_v31  ;;  %1196 = vperm.xlu1 %2596, %v1186_v15  }
  0x25   :  { %2532 = vmatpush1.bf16.msra.mxu1 %v2531_v14  ;;  %1090 = vmatprep.mubr.f32.mxu1 %v3751_v3  ;;  %v481_v14 = vrot.slane %v3010_v61, %v2963_v41 }
  0x27   :  { %1108 = vperm.xlu0 %2595, %v1098_v16   ;;  %v461_v16 = vrot.slane %v2987_v50, %v2989_v51 }
  0x28   :  { %2403 = vmatmul.mubr.msk.f32.vlgmr.msra.gmra.mrb[12].mxu1 %vm121_vm0, %v2768_v31  ;;  %1252 = vperm.xlu1 %2596, %v1242_v17   ;;  %v1484_v31 = vld [vmem:[%s3737_s12 + $0x18] sm:$0xff]  ;;  %v485_v17 = vrot.slane %v3010_v61, %v2974_v45 }
  0x29   :  { %1707 = vmatprep.mubr.f32.mxu1 %v3751_v3 }
  0x2b   :  { %1247 = vperm.xlu0 %2595, %v1241_v18  }
  0x2c   :  { %1118 = vperm.xlu1 %2596, %v1100_v19  }
  0x2f   :  { %1113 = vperm.xlu0 %2595, %v1099_v20  }
  0x30   :  { %1206 = vperm.xlu1 %2596, %v1188_v21  }
  0x33   :  { %1201 = vperm.xlu0 %2595, %v1187_v22  }
  0x34   :  { %1262 = vperm.xlu1 %2596, %v1244_v23  }
  0x37   :  { %1257 = vperm.xlu0 %2595, %v1243_v24  }
  0x38   :  { %1404 = vperm.xlu1 %2596, %v1394_v25  }
  0x3b   :  { %1399 = vperm.xlu0 %2595, %v1393_v26  }
  0x3c   :  { %1492 = vperm.xlu1 %2596, %v1482_v27  }
  0x3f   :  { %1487 = vperm.xlu0 %2595, %v1481_v28  }
  0x40   :  { %1414 = vperm.xlu1 %2596, %v1396_v29  }
  0x43   :  { %1409 = vperm.xlu0 %2595, %v1395_v30  }
  0x44   :  { %1502 = vperm.xlu1 %2596, %v1484_v31  }
  0x47   :  { %1497 = vperm.xlu0 %2595, %v1483_v32  }
  0x9f   :  { %v2953_v34 = vpop.permute.xlu1 %1191 }
  0xa2   :  { %v2951_v33 = vpop.permute.xlu0 %1103 }
  0xa3   :  { %v2957_v36 = vpop.permute.xlu1 %1196 }
  0xa6   :  { %v2955_v35 = vpop.permute.xlu0 %1108 }
  0xa7   :  { %v2961_v40 = vpop.permute.xlu1 %1252 }
  0xaa   :  { %v2959_v38 = vpop.permute.xlu0 %1247 }
  0xab   :  { %v2976_v46 = vpop.permute.xlu1 %1118 }
  0xae   :  { %v2965_v42 = vpop.permute.xlu0 %1113 }
  0xaf   :  { %v3018_v5 = vpop.permute.xlu1 %1206 }
  0xb2   :  { %v2999_v56 = vpop.permute.xlu0 %1201 }
  0xb6   :  { %v3052_v31 = vpop.permute.xlu0 %1257 }
  0xe3   :  { %v191_v57 = vpop.f32.mrb[0].mxu1 }
  0xe4   :  { %v192_v62 = vadd.f32 %v191_v57, %v84_v49  ;;  %v193_v0 = vpop.f32.mrb[1].mxu1  ;;  %v3058_v49 = vpop.permute.xlu1 %1262 }
  0xe5   :  { %v333_v63 = vpop.f32.mrb[0].mxu0  ;;  %v194_v12 = vadd.f32 %v193_v0, %v88_v55 }
  0xe6   :  { %v334_v6 = vadd.f32 %v333_v63, %v100_v53  ;;  %v335_v7 = vpop.f32.mrb[1].mxu0  ;;  %v1268_v11 = vrot.slane %v192_v62, %v2963_v41 }
  0xe7   :  { %v262_v15 = vpop.f32.mrb[2].mxu1  ;;  %v336_v26 = vadd.f32 %v335_v7, %v104_v58  ;;  %v1272_v37 = vrot.slane %v194_v12, %v2963_v41 }
  0xe8   :  { %v1284_v20 = vrot.slane %v334_v6, %v2963_v41  ;;  %v264_v22 = vpop.f32.mrb[3].mxu1  ;;  %v3055_v32 = vmul.f32 %v1268_v11, %v2959_v38  ;;  %v263_v39 = vadd.f32 %v262_v15, %v92_v59  ;;  %v3061_v53 = vmul.f32 %v1268_v11, %v2961_v40 }
  0xe9   :  { %v595_v21 = vpop.f32.mrb[2].mxu0  ;;  %v3064_v55 = vmul.f32 %v1268_v11, %v3052_v31  ;;  %v265_v57 = vadd.f32 %v264_v22, %v96_v1  ;;  %v3067_v63 = vmul.f32 %v1268_v11, %v3058_v49  ;;  %v3109_v29 = vmul.f32 %v1272_v37, %v3058_v49 }
  0xea   :  { %v597_v27 = vpop.f32.mrb[3].mxu0  ;;  %v596_v43 = vadd.f32 %v595_v21, %v449_v60  ;;  %v3070_v0 = vmul.f32 %v1284_v20, %v2959_v38  ;;  %v1276_v59 = vrot.slane %v263_v39, %v2963_v41  ;;  %v3074_v12 = vmul.f32 %v1284_v20, %v2961_v40 }
  0xeb   :  { %v598_v58 = vadd.f32 %v597_v27, %v453_v2  ;;  %v404_v62 = vpop.f32.mrb[4].mxu1  ;;  %v3077_v15 = vmul.f32 %v1284_v20, %v3052_v31  ;;  %v3080_v1 = vmul.f32 %v1284_v20, %v3058_v49  ;;  %v3083_v2 = vrot.slane %v336_v26, %v2963_v41 }
  0xec   :  { %v405_v60 = vadd.f32 %v404_v62, %v108_v4  ;;  %v406_v7 = vpop.f32.mrb[5].mxu1  ;;  %v1124_v21 = vrot.slane %v596_v43, %v2963_v41  ;;  %v1298_v4 = vmul.f32 %v1272_v37, %v2959_v38  ;;  %v3088_v27 = vmul.f32 %v1272_v37, %v2961_v40 }
  0xed   :  { %v737_v6 = vpop.f32.mrb[4].mxu0  ;;  %3775 = vst [vmem:[#allocation8_spill] sm:$0xff] %v3080_v1  ;;  %v3091_v39 = vrot.slane %v265_v57, %v2963_v41  ;;  %v3094_v62 = vrot.slane %v598_v58, %v2963_v41  ;;  %v407_v20 = vadd.f32 %v406_v7, %v112_v9  ;;  %v3097_v26 = vmul.f32 %v1272_v37, %v3052_v31 }
  0xee   :  { %v739_v11 = vpop.f32.mrb[5].mxu0  ;;  %v738_v22 = vadd.f32 %v737_v6, %v465_v8  ;;  %v3100_v30 = vmul.f32 %v1276_v59, %v2959_v38  ;;  %v3103_v8 = vmul.f32 %v1276_v59, %v2961_v40  ;;  %v3106_v43 = vrot.slane %v405_v60, %v2963_v41 }
  0xef   :  { %v666_v3 = vpop.f32.mrb[6].mxu1  ;;  %v3112_v9 = vmul.f32 %v1276_v59, %v3052_v31  ;;  %v3115_v58 = vmul.f32 %v1276_v59, %v3058_v49  ;;  %v1153_v24 = vmul.f32 %v1124_v21, %v2951_v33  ;;  %v1161_v60 = vmul.f32 %v1124_v21, %v2955_v35 }
  0xf0   :  { %3776 = vst [vmem:[#allocation9_spill] sm:$0xff] %v3106_v43  ;;  %v668_v57 = vpop.f32.mrb[7].mxu1  ;;  %v667_v7 = vadd.f32 %v666_v3, %v457_v13  ;;  %v1169_v23 = vmul.f32 %v1124_v21, %v2965_v42  ;;  %v1140_v19 = vrot.slane %v738_v22, %v2963_v41  ;;  %v3124_v37 = vmul.f32 %v1124_v21, %v2976_v46 }
  0xf1   :  { %v879_v6 = vpop.f32.mrb[6].mxu0  ;;  %v3127_v18 = vrot.slane %v407_v20, %v2963_v41  ;;  %v740_v3 = vadd.f32 %v739_v11, %v469_v10  ;;  %v669_v13 = vadd.f32 %v668_v57, %v461_v16  ;;  %v3137_v59 = vmul.f32 %v3106_v43, %v2959_v38 }
  0xf2   :  { %v3117_v28 = vadd.f32 %v879_v6, %v481_v14  ;;  %v881_v25 = vpop.f32.mrb[7].mxu0  ;;  %v3141_v21 = vmul.f32 %v3106_v43, %v2961_v40  ;;  %v3145_v22 = vmul.f32 %v3106_v43, %v3052_v31  ;;  %v1154_v10 = vmul.f32 %v3094_v62, %v2951_v33 }
  0xf3   :  { %3778 = vst [vmem:[#allocation11_spill] sm:$0xff] %v3127_v18  ;;  %v808_v14 = vpop.f32.mrb[8].mxu1  ;;  %3779 = vst [vmem:[#allocation12_spill] sm:$0xff] %v3137_v59  ;;  %v1132_v16 = vrot.slane %v667_v7, %v2963_v41  ;;  %v3153_v11 = vadd.f32 %v881_v25, %v485_v17  ;;  %v3783_v57 = vrot.slane %v2987_v50, %v2991_v52 }
  0xf4   :  { %3777 = vst [vmem:[#allocation10_spill] sm:$0xff] %v3117_v28  ;;  %3780 = vst [vmem:[#allocation13_spill] sm:$0xff] %v3141_v21  ;;  %v810_v6 = vpop.f32.mrb[9].mxu1  ;;  %v3784_v43 = vrot.slane %v3010_v61, %v2972_v44  ;;  %v3164_v59 = vmul.f32 %v1140_v19, %v2951_v33  ;;  %v3167_v7 = vmul.f32 %v1140_v19, %v2955_v35 }
  0xf5   :  { %3781 = vst [vmem:[#allocation14_spill] sm:$0xff] %v3145_v22  ;;  %v1021_v20 = vpop.f32.mrb[8].mxu0  ;;  %3782 = vst [vmem:[#allocation15_spill] sm:$0xff] %v3153_v11  ;;  %v809_v28 = vadd.f32 %v808_v14, %v3783_v57  ;;  %v3170_v45 = vmul.f32 %v1140_v19, %v2965_v42  ;;  %v3786_v17 = vrot.slane %v2987_v50, %v2995_v54 }
  0xf6   :  { %v3161_v22 = vadd.f32 %v1021_v20, %v3784_v43  ;;  %v1023_v21 = vpop.f32.mrb[9].mxu0  ;;  %v3176_v14 = vmul.f32 %v1140_v19, %v2976_v46  ;;  %v3179_v43 = vrot.slane %v740_v3, %v2963_v41  ;;  %v3182_v20 = vrot.slane %v669_v13, %v2963_v41 }
  0xf7   :  { %v811_v25 = vadd.f32 %v810_v6, %v3786_v17  ;;  %v1148_v57 = vrot.slane %v809_v28, %v2963_v41  ;;  %v950_v44 = vpop.f32.mrb[10].mxu1  ;;  %v3789_v50 = vrot.slane %v3010_v61, %v2980_v48  ;;  %v1162_v19 = vmul.f32 %v3094_v62, %v2955_v35 }
  0xf8   :  { %3785 = vst [vmem:[#allocation16_spill] sm:$0xff] %v3161_v22  ;;  %v3787_v22 = vrot.slane %v3010_v61, %v2978_v47  ;;  %v1210_v3 = vadd.f32 %v2953_v34, %v1154_v10  ;;  %v952_v13 = vpop.f32.mrb[11].mxu1  ;;  %v1155_v17 = vmul.f32 %v1132_v16, %v2951_v33  ;;  %v3200_v28 = vmul.f32 %v1132_v16, %v2955_v35 }
  0xf9   :  { %v3193_v6 = vadd.f32 %v950_v44, %v3789_v50  ;;  %v3203_v47 = vmul.f32 %v1132_v16, %v2965_v42  ;;  %v3209_v44 = vmul.f32 %v1148_v57, %v2951_v33  ;;  %v1218_v10 = vadd.f32 %v2957_v36, %v1162_v19 }
  0xfa   :  { %v3188_v11 = vadd.f32 %v1023_v21, %v3787_v22  ;;  %v3206_v21 = vmul.f32 %v1132_v16, %v2976_v46  ;;  %v3212_v22 = vrot.slane %v811_v25, %v2963_v41  ;;  %v1330_v50 = vadd.f32 %v1298_v4, %v1210_v3 }
  0xfb   :  { %3790 = vst [vmem:[#allocation18_spill] sm:$0xff] %v3193_v6  ;;  %3791 = vst [vmem:[#allocation19_spill] sm:$0xff] %v3209_v44  ;;  %v3792_v48 = vrot.slane %v3010_v61, %v2989_v51  ;;  %v1209_v6 = vadd.f32 %v2953_v34, %v1153_v24  ;;  %v1217_v18 = vadd.f32 %v2957_v36, %v1161_v60  ;;  %v1092_v1 = vpop.f32.mrb[12].mxu1 }
  0xfc   :  { %3788 = vst [vmem:[#allocation17_spill] sm:$0xff] %v3188_v11  ;;  %v1170_v16 = vmul.f32 %v3094_v62, %v2965_v42  ;;  %v1338_v44 = vadd.f32 %v3088_v27, %v1218_v10  ;;  %v1362_v25 = vmax.f32 %v1330_v50, 0.0  ;;  %v1178_v19 = vmul.f32 %v3094_v62, %v2976_v46 }
  0xfd   :  { %v3218_v11 = vadd.f32 %v952_v13, %v3792_v48  ;;  %v3793_v4 = vrot.slane %v3010_v61, %v2991_v52  ;;  %v1094_v48 = vpop.f32.mrb[13].mxu1  ;;  %v3233_v24 = vmul.f32 %v1148_v57, %v2955_v35  ;;  %v1329_v60 = vadd.f32 %v3055_v32, %v1209_v6 }
  0xfe   :  { %v1337_v13 = vadd.f32 %v3061_v53, %v1217_v18  ;;  %v1226_v51 = vadd.f32 %v2999_v56, %v1170_v16  ;;  %v3239_v27 = vmul.f32 %v1148_v57, %v2965_v42  ;;  %v1370_v10 = vmax.f32 %v1338_v44, 0.0 }
  0xff   :  { %v3230_v3 = vadd.f32 %v1092_v1, %v3793_v4  ;;  %v1234_v62 = vadd.f32 %v3018_v5, %v1178_v19  ;;  %v3795_v1 = vrot.slane %v3010_v61, %v2995_v54  ;;  %v1361_v4 = vmax.f32 %v1329_v60, 0.0 }
 0x100   :  { %v1369_v52 = vmax.f32 %v1337_v13, 0.0  ;;  %v1225_v32 = vadd.f32 %v2999_v56, %v1169_v23  ;;  %v3250_v18 = vmul.f32 %v1148_v57, %v2976_v46  ;;  %v2533_v53 = vpack.c.bf16 %v1370_v10, %v1362_v25 }
 0x101   :  { %3794 = vst [vmem:[#allocation20_spill] sm:$0xff] %v3230_v3  ;;  %v3245_v50 = vadd.f32 %v1094_v48, %v3795_v1  ;;  %v1346_v3 = vadd.f32 %v3097_v26, %v1226_v51  ;;  %v1354_v6 = vadd.f32 %v3109_v29, %v1234_v62  ;;  %v1233_v44 = vadd.f32 %v3018_v5, %v3124_v37 }
 0x102   :  { %v2535_v16 = vpack.c.bf16 %v1369_v52, %v1361_v4  ;;  %v1345_v19 = vadd.f32 %v3064_v55, %v1225_v32  ;;  %v1158_v48 = vmul.f32 %v3179_v43, %v2951_v33  ;;  %2534 = vmatprep.subr.bf16.mxu0 %v2533_v53  ;;  %v1166_v26 = vmul.f32 %v3179_v43, %v2955_v35 }
 0x103   :  { %v1378_v61 = vmax.f32 %v1346_v3, 0.0  ;;  %v1386_v51 = vmax.f32 %v1354_v6, 0.0  ;;  %v1353_v23 = vadd.f32 %v3067_v63, %v1233_v44  ;;  %v1302_v29 = vmul.f32 %v3083_v2, %v2959_v38 }
 0x104   :  { %2536 = vmatpush1.bf16.msra.mxu0 %v2535_v16  ;;  %v1377_v37 = vmax.f32 %v1345_v19, 0.0  ;;  %v1214_v52 = vadd.f32 %v2953_v34, %v1158_v48  ;;  %v1310_v55 = vmul.f32 %v3083_v2, %v2961_v40  ;;  %v1156_v57 = vmul.f32 %v3182_v20, %v2951_v33 }
 0x105   :  { %v2537_v25 = vpack.c.bf16 %v1386_v51, %v1378_v61  ;;  %v1385_v3 = vmax.f32 %v1353_v23, 0.0  ;;  %v1222_v63 = vadd.f32 %v2957_v36, %v1166_v26  ;;  %v1164_v60 = vmul.f32 %v3182_v20, %v2955_v35  ;;  %v3285_v51 = vld [vmem:[%s3740_s13] sm:$0xff] }
 0x106   :  { %v1334_v13 = vadd.f32 %v1302_v29, %v1214_v52  ;;  %v1212_v10 = vadd.f32 %v2953_v34, %v1156_v57  ;;  %v1300_v62 = vmul.f32 %v3091_v39, %v2959_v38  ;;  %v1308_v1 = vmul.f32 %v3091_v39, %v2961_v40 }
 0x107   :  { %2538 = vmatprep.subr.bf16.mxu0 %v2537_v25  ;;  %v2539_v4 = vpack.c.bf16 %v1385_v3, %v1377_v37  ;;  %v1342_v32 = vadd.f32 %v1310_v55, %v1222_v63  ;;  %v1220_v53 = vadd.f32 %v2957_v36, %v1164_v60  ;;  %v1211_v6 = vadd.f32 %v2953_v34, %v1155_v17 }
 0x108   :  { %v1366_v44 = vmax.f32 %v1334_v13, 0.0  ;;  %v1332_v16 = vadd.f32 %v1300_v62, %v1212_v10  ;;  %v1219_v61 = vadd.f32 %v2957_v36, %v3200_v28  ;;  %v1213_v19 = vadd.f32 %v2953_v34, %v3164_v59  ;;  %v3308_v10 = vld [vmem:[%s3740_s13 + $0x8] sm:$0xff] }
 0x109   :  { %2540 = vmatpush1.bf16.msra.mxu0 %v2539_v4  ;;  %v1374_v48 = vmax.f32 %v1342_v32, 0.0  ;;  %v1340_v23 = vadd.f32 %v1308_v1, %v1220_v53  ;;  %v1331_v26 = vadd.f32 %v3100_v30, %v1211_v6  ;;  %v1221_v17 = vadd.f32 %v2957_v36, %v3167_v7 }
 0x10a   :  { %v1364_v29 = vmax.f32 %v1332_v16, 0.0  ;;  %v1339_v37 = vadd.f32 %v3103_v8, %v1219_v61  ;;  %v1333_v28 = vadd.f32 %v3070_v0, %v1213_v19  ;;  %v1172_v59 = vmul.f32 %v3182_v20, %v2965_v42 }
 0x10b   :  { %v2549_v52 = vpack.c.bf16 %v1374_v48, %v1366_v44  ;;  %v1372_v55 = vmax.f32 %v1340_v23, 0.0  ;;  %v1363_v57 = vmax.f32 %v1331_v26, 0.0  ;;  %v1341_v25 = vadd.f32 %v3074_v12, %v1221_v17  ;;  %v3333_v23 = vld [vmem:[%s3740_s13 + $0x10] sm:$0xff] }
 0x10c   :  { %2404 = vmatmul.mubr.msk.f32.vlgmr.msra.gmra.mrb[10].mxu0 %vm1541_vm1, %v3285_v51  ;;  %v1371_v30 = vmax.f32 %v1339_v37, 0.0  ;;  %v1365_v3 = vmax.f32 %v1333_v28, 0.0  ;;  %v1180_v7 = vmul.f32 %v3182_v20, %v2976_v46  ;;  %v1228_v8 = vadd.f32 %v2999_v56, %v1172_v59 }
 0x10d   :  { %2550 = vmatprep.subr.bf16.mxu0 %v2549_v52  ;;  %v2541_v0 = vpack.c.bf16 %v1372_v55, %v1364_v29  ;;  %v1373_v63 = vmax.f32 %v1341_v25, 0.0  ;;  %v1316_v60 = vmul.f32 %v3091_v39, %v3052_v31  ;;  %v1324_v13 = vmul.f32 %v3091_v39, %v3058_v49 }
 0x10e   :  { %v3796_v12 = vmov 0.0   ;;  %v2543_v62 = vpack.c.bf16 %v1371_v30, %v1363_v57  ;;  %v1236_v20 = vadd.f32 %v3018_v5, %v1180_v7  ;;  %v1174_v1 = vmul.f32 %v3179_v43, %v2965_v42  ;;  %v3797_v57 = vld [vmem:[#allocation8_spill] sm:$0xff]  ;;  %v3798_v7 = vld [vmem:[#allocation11_spill] sm:$0xff] }
 0x10f   :  { %1624 = vmatprep.mubr.f32.mxu0 %v3796_v12  ;;  %v1182_v4 = vmul.f32 %v3179_v43, %v2976_v46  ;;  %2542 = vmatprep.subr.bf16.mxu1 %v2541_v0  ;;  %v2551_v32 = vpack.c.bf16 %v1373_v63, %v1365_v3  ;;  %v1348_v53 = vadd.f32 %v1316_v60, %v1228_v8 }
 0x110   :  { %v1318_v39 = vmul.f32 %v3083_v2, %v3052_v31  ;;  %v1326_v6 = vmul.f32 %v3083_v2, %v3058_v49  ;;  %2544 = vmatpush1.bf16.msra.mxu1 %v2543_v62  ;;  %v1356_v44 = vadd.f32 %v1324_v13, %v1236_v20  ;;  %v1230_v16 = vadd.f32 %v2999_v56, %v1174_v1  ;;  %v3799_v13 = vld [vmem:[#allocation19_spill] sm:$0xff] }
 0x111   :  { %v1238_v61 = vadd.f32 %v3018_v5, %v1182_v4  ;;  %2405 = vmatmul.mubr.msk.f32.gmra.mrb[12].mxu0 %vm1541_vm1, %v3308_v10  ;;  %v1380_v43 = vmax.f32 %v1348_v53, 0.0  ;;  %v1227_v19 = vadd.f32 %v2999_v56, %v3203_v47  ;;  %v1235_v48 = vadd.f32 %v3018_v5, %v3206_v21  ;;  %v3800_v53 = vld [vmem:[#allocation12_spill] sm:$0xff] }
 0x112   :  { %2552 = vmatpush1.bf16.msra.mxu0 %v2551_v32  ;;  %v1229_v2 = vadd.f32 %v2999_v56, %v3170_v45  ;;  %1630 = vmatprep.mubr.f32.mxu0 %v3796_v12  ;;  %v1388_v26 = vmax.f32 %v1356_v44, 0.0  ;;  %v1350_v17 = vadd.f32 %v1318_v39, %v1230_v16  ;;  %v1237_v37 = vadd.f32 %v3018_v5, %v3176_v14 }
 0x113   :  { %v1358_v29 = vadd.f32 %v1326_v6, %v1238_v61  ;;  %v1347_v47 = vadd.f32 %v3112_v9, %v1227_v19  ;;  %v1355_v21 = vadd.f32 %v3115_v58, %v1235_v48  ;;  %v1160_v45 = vmul.f32 %v3212_v22, %v2951_v33 }
 0x114   :  { %v1349_v28 = vadd.f32 %v3077_v15, %v1229_v2  ;;  %v2545_v59 = vpack.c.bf16 %v1388_v26, %v1380_v43  ;;  %v1382_v52 = vmax.f32 %v1350_v17, 0.0  ;;  %v1357_v25 = vadd.f32 %v3797_v57, %v1237_v37 }
 0x115   :  { %v1390_v55 = vmax.f32 %v1358_v29, 0.0  ;;  %2406 = vmatmul.mubr.msk.f32.gmra.mrb[14].mxu0 %vm1541_vm1, %v3333_v23  ;;  %v1379_v30 = vmax.f32 %v1347_v47, 0.0  ;;  %v1387_v3 = vmax.f32 %v1355_v21, 0.0  ;;  %v1168_v9 = vmul.f32 %v3212_v22, %v2955_v35  ;;  %v3803_v29 = vld [vmem:[#allocation14_spill] sm:$0xff] }
 0x116   :  { %v1381_v14 = vmax.f32 %v1349_v28, 0.0  ;;  %1636 = vmatprep.mubr.f32.mxu0 %v3796_v12  ;;  %2546 = vmatprep.subr.bf16.mxu1 %v2545_v59  ;;  %v1389_v58 = vmax.f32 %v1357_v25, 0.0  ;;  %v1216_v33 = vadd.f32 %v2953_v34, %v1160_v45  ;;  %v1304_v8 = vmul.f32 %v3798_v7, %v2959_v38  ;;  %v1540_v38 = vld [vmem:[%s3740_s13 + $0x18] sm:$0xff]  ;;  %v3413_v45 = vpop.permute.xlu0 %1399  ;;  %v3415_v59 = vpop.permute.xlu1 %1404 }
 0x117   :  { %v2553_v15 = vpack.c.bf16 %v1390_v55, %v1382_v52  ;;  %v2547_v0 = vpack.c.bf16 %v1387_v3, %v1379_v30  ;;  %v1224_v63 = vadd.f32 %v2957_v36, %v1168_v9  ;;  %v1312_v60 = vmul.f32 %v3798_v7, %v2961_v40 }
 0x118   :  { %v1215_v62 = vadd.f32 %v2953_v34, %v3799_v13  ;;  %v2555_v35 = vpack.c.bf16 %v1389_v58, %v1381_v14  ;;  %v1336_v20 = vadd.f32 %v1304_v8, %v1216_v33  ;;  %v1223_v1 = vadd.f32 %v2957_v36, %v3233_v24  ;;  %v3801_v36 = vld [vmem:[#allocation13_spill] sm:$0xff]  ;;  %v3807_v33 = vld [vmem:[#allocation16_spill] sm:$0xff] }
 0x119   :  { %2554 = vmatprep.subr.bf16.mxu0 %v2553_v15  ;;  %v1176_v4 = vmul.f32 %v3212_v22, %v2965_v42  ;;  %2548 = vmatpush1.bf16.msra.mxu1 %v2547_v0  ;;  %v1344_v32 = vadd.f32 %v1312_v60, %v1224_v63  ;;  %v1184_v34 = vmul.f32 %v3212_v22, %v2976_v46  ;;  %v3443_v8 = vld [vmem:[%s3741_s7] sm:$0xff] }
 0x11a   :  { %v1335_v40 = vadd.f32 %v3800_v53, %v1215_v62  ;;  %v1320_v39 = vmul.f32 %v3798_v7, %v3052_v31  ;;  %2556 = vmatpush1.bf16.msra.mxu0 %v2555_v35  ;;  %v1368_v6 = vmax.f32 %v1336_v20, 0.0  ;;  %v1343_v24 = vadd.f32 %v3801_v36, %v1223_v1  ;;  %v3802_v31 = vld [vmem:[#allocation9_spill] sm:$0xff]  ;;  %v3417_v52 = vpop.permute.xlu0 %1487  ;;  %v3421_v57 = vpop.permute.xlu1 %1492 }
 0x11b   :  { %v1232_v42 = vadd.f32 %v2999_v56, %v1176_v4  ;;  %v1328_v44 = vmul.f32 %v3798_v7, %v3058_v49  ;;  %v1376_v16 = vmax.f32 %v1344_v32, 0.0  ;;  %v1240_v43 = vadd.f32 %v3018_v5, %v1184_v34  ;;  %2407 = vmatmul.mubr.msk.f32.gmra.mrb[16].mxu0 %vm1541_vm1, %v1540_v38  ;;  %v3808_v60 = vld [vmem:[#allocation17_spill] sm:$0xff] }
 0x11c   :  { %v1367_v61 = vmax.f32 %v1335_v40, 0.0  ;;  %v1231_v46 = vadd.f32 %v2999_v56, %v3239_v27  ;;  %v1327_v22 = vmul.f32 %v3802_v31, %v3058_v49  ;;  %2408 = vmatmul.mubr.msk.f32.vlgmr.msra.gmra.mrb[14].mxu1 %vm1541_vm1, %v3285_v51  ;;  %v1375_v19 = vmax.f32 %v1343_v24, 0.0  ;;  %1796 = vmatprep.mubr.f32.mxu0 %v3796_v12 }
 0x11d   :  { %v1352_v48 = vadd.f32 %v1320_v39, %v1232_v42  ;;  %v1239_v2 = vadd.f32 %v3018_v5, %v3250_v18  ;;  %v2557_v26 = vpack.c.bf16 %v1376_v16, %v1368_v6  ;;  %v1360_v17 = vadd.f32 %v1328_v44, %v1240_v43  ;;  %1713 = vmatprep.mubr.f32.mxu1 %v3796_v12  ;;  %v3810_v42 = vld [vmem:[#allocation3_spill] sm:$0xff] }
 0x11e   :  { %v1351_v37 = vadd.f32 %v3803_v29, %v1231_v46  ;;  %v2559_v56 = vpack.c.bf16 %v1375_v19, %v1367_v61  ;;  %v3425_v30 = vpop.permute.xlu0 %1409  ;;  %v1432_v15 = vrot.slane %v3218_v11, %v2963_v41  ;;  %v3434_v58 = vpop.permute.xlu1 %1414  ;;  %v3438_v7 = vrot.slane %v3807_v33, %v2963_v41  ;;  %v3809_v11 = vld [vmem:[#allocation20_spill] sm:$0xff] }
 0x11f   :  { %v1384_v27 = vmax.f32 %v1352_v48, 0.0  ;;  %v1359_v47 = vadd.f32 %v1327_v22, %v1239_v2  ;;  %2558 = vmatprep.subr.bf16.mxu1 %v2557_v26  ;;  %v1392_v49 = vmax.f32 %v1360_v17, 0.0  ;;  %2412 = vmatmul.mubr.msk.f32.vlgmr.msra.gmra.mrb[18].mxu0 %vm1541_vm1, %v3285_v51  ;;  %v3449_v13 = vrot.slane %v3808_v60, %v2963_v41 }
 0x120   :  { %v1383_v21 = vmax.f32 %v1351_v37, 0.0  ;;  %2560 = vmatpush1.bf16.msra.mxu1 %v2559_v56  ;;  %1802 = vmatprep.mubr.f32.mxu0 %v3796_v12  ;;  %v3453_v62 = vrot.slane %v3809_v11, %v2963_v41  ;;  %v3457_v35 = vrot.slane %v3245_v50, %v2963_v41  ;;  %v3468_v39 = vrot.slane %v3443_v8, %v2963_v41 }
 0x121   :  { %v1391_v28 = vmax.f32 %v1359_v47, 0.0  ;;  %v2561_v5 = vpack.c.bf16 %v1392_v49, %v1384_v27  ;;  %2409 = vmatmul.mubr.msk.f32.gmra.mrb[16].mxu1 %vm1541_vm1, %v3308_v10  ;;  %v1452_v6 = vmul.f32 %v1432_v15, %v3413_v45  ;;  %v3474_v44 = vrot.slane %v3443_v8, %v3810_v42 }
 0x122   :  { %1719 = vmatprep.mubr.f32.mxu1 %v3796_v12  ;;  %v3464_v40 = vpop.permute.xlu0 %1497  ;;  %v1460_v31 = vmul.f32 %v1432_v15, %v3415_v59  ;;  %v3481_v22 = vpop.permute.xlu1 %1502  ;;  %v1461_v11 = vmul.f32 %v3438_v7, %v3415_v59 }
 0x123   :  { %v2563_v18 = vpack.c.bf16 %v1391_v28, %v1383_v21  ;;  %2562 = vmatprep.subr.bf16.mxu1 %v2561_v5  ;;  %2413 = vmatmul.mubr.msk.f32.gmra.mrb[20].mxu0 %vm1541_vm1, %v3308_v10  ;;  %v1508_v27 = vadd.f32 %v3417_v52, %v1452_v6  ;;  %v1453_v28 = vmul.f32 %v3438_v7, %v3413_v45 }
 0x124   :  { %1808 = vmatprep.mubr.f32.mxu0 %v3796_v12  ;;  %v1468_v5 = vmul.f32 %v1432_v15, %v3425_v30 }
 0x125   :  { %2564 = vmatpush1.bf16.msra.mxu1 %v2563_v18 }
 0x126   :  { %2410 = vmatmul.mubr.msk.f32.gmra.mrb[18].mxu1 %vm1541_vm1, %v3333_v23  ;;  %v3528_v42 = vadd.f32 %v3464_v40, %v1468_v5 }
 0x127   :  { %1725 = vmatprep.mubr.f32.mxu1 %v3796_v12  ;;  %2414 = vmatmul.mubr.msk.f32.gmra.mrb[22].mxu0 %vm1541_vm1, %v3333_v23 }
 0x128   :  { %1814 = vmatprep.mubr.f32.mxu0 %v3796_v12 }
 0x12a   :  { %2411 = vmatmul.mubr.msk.f32.gmra.mrb[20].mxu1 %vm1541_vm1, %v1540_v38 }
 0x12b   :  { %1885 = vmatprep.mubr.f32.mxu1 %v3796_v12  ;;  %2415 = vmatmul.mubr.msk.f32.gmra.mrb[24].mxu0 %vm1541_vm1, %v1540_v38 }
 0x12e   :  { %2416 = vmatmul.mubr.msk.f32.vlgmr.msra.gmra.mrb[22].mxu1 %vm1541_vm1, %v3285_v51  ;;  %v3804_v51 = vld [vmem:[#allocation10_spill] sm:$0xff] }
 0x12f   :  { %1891 = vmatprep.mubr.f32.mxu1 %v3796_v12  ;;  %v1420_v55 = vrot.slane %v3804_v51, %v2963_v41 }
 0x131   :  { %v1457_v9 = vmul.f32 %v1420_v55, %v3415_v59  ;;  %v1465_v63 = vmul.f32 %v1420_v55, %v3425_v30  ;;  %v1473_v36 = vmul.f32 %v1420_v55, %v3434_v58 }
 0x132   :  { %2417 = vmatmul.mubr.msk.f32.gmra.mrb[24].mxu1 %vm1541_vm1, %v3308_v10  ;;  %v3805_v10 = vld [vmem:[#allocation15_spill] sm:$0xff] }
 0x133   :  { %1897 = vmatprep.mubr.f32.mxu1 %v3796_v12  ;;  %v1424_v25 = vrot.slane %v3805_v10, %v2963_v41  ;;  %v1521_v61 = vadd.f32 %v3464_v40, %v1465_v63  ;;  %v1529_v47 = vadd.f32 %v3481_v22, %v1473_v36  ;;  %v3498_v10 = vadd.f32 %v3421_v57, %v1460_v31 }
 0x134   :  { %v1509_v36 = vadd.f32 %v3417_v52, %v1453_v28  ;;  %v3558_v28 = vmul.f32 %v3453_v62, %v3415_v59 }
 0x135   :  { %v1450_v14 = vmul.f32 %v1424_v25, %v3413_v45  ;;  %v1458_v0 = vmul.f32 %v1424_v25, %v3415_v59  ;;  %v1466_v53 = vmul.f32 %v1424_v25, %v3425_v30 }
 0x136   :  { %2418 = vmatmul.mubr.msk.f32.gmra.mrb[26].mxu1 %vm1541_vm1, %v3333_v23  ;;  %v3806_v23 = vld [vmem:[#allocation18_spill] sm:$0xff] }
 0x137   :  { %1903 = vmatprep.mubr.f32.mxu1 %v3796_v12  ;;  %v1449_v12 = vmul.f32 %v1420_v55, %v3413_v45  ;;  %v1428_v3 = vrot.slane %v3806_v23, %v2963_v41  ;;  %v1506_v4 = vadd.f32 %v3417_v52, %v1450_v14  ;;  %v1514_v16 = vadd.f32 %v3421_v57, %v1458_v0 }
 0x138   :  { %v1474_v41 = vmul.f32 %v1424_v25, %v3434_v58  ;;  %v1522_v26 = vadd.f32 %v3464_v40, %v1466_v53  ;;  %v1469_v53 = vmul.f32 %v3438_v7, %v3425_v30 }
 0x139   :  { %v1505_v20 = vadd.f32 %v3417_v52, %v1449_v12  ;;  %v1451_v32 = vmul.f32 %v1428_v3, %v3413_v45  ;;  %v1459_v46 = vmul.f32 %v1428_v3, %v3415_v59  ;;  %v1467_v17 = vmul.f32 %v1428_v3, %v3425_v30 }
 0x13a   :  { %2419 = vmatmul.mubr.msk.f32.gmra.mrb[28].mxu1 %vm1541_vm1, %v1540_v38  ;;  %v1513_v38 = vadd.f32 %v3421_v57, %v1457_v9  ;;  %v1530_v55 = vadd.f32 %v3481_v22, %v1474_v41  ;;  %v1454_v9 = vmul.f32 %v3449_v13, %v3413_v45  ;;  %v1475_v60 = vmul.f32 %v1428_v3, %v3434_v58 }
 0x13b   :  { %v1507_v2 = vadd.f32 %v3417_v52, %v1451_v32  ;;  %v3494_v51 = vadd.f32 %v3421_v57, %v1459_v46  ;;  %v3503_v14 = vadd.f32 %v3464_v40, %v1467_v17  ;;  %v1470_v3 = vmul.f32 %v3449_v13, %v3425_v30 }
 0x13c   :  { %v1517_v46 = vadd.f32 %v3421_v57, %v1461_v11  ;;  %v1477_v17 = vmul.f32 %v3438_v7, %v3434_v58  ;;  %v1478_v7 = vmul.f32 %v3449_v13, %v3434_v58 }
 0x1df   :  { %v1620_v1 = vpop.f32.mrb[10].mxu0 }
 0x1e0   :  { %v1910_v34 = vadd.f32 %v1620_v1, %v1505_v20  ;;  %v1622_v50 = vpop.f32.mrb[11].mxu0 }
 0x1e1   :  { %v1911_v24 = vadd.f32 %v1622_v50, %v1506_v4  ;;  %v1476_v4 = vmul.f32 %v1432_v15, %v3434_v58  ;;  %v1456_v15 = vmul.f32 %v3457_v35, %v3413_v45 }
 0x1e2   :  { %v1942_v43 = vmax.f32 %v1910_v34, 0.0  ;;  %v1455_v34 = vmul.f32 %v3453_v62, %v3413_v45 }
 0x1e3   :  { %v1943_v19 = vmax.f32 %v1911_v24, 0.0  ;;  %v3537_v41 = vadd.f32 %v3481_v22, %v1476_v4  ;;  %v3813_v4 = vld [vmem:[#allocation2_spill] sm:$0xff] }
 0x1e4   :  { %v1626_v48 = vpop.f32.mrb[12].mxu0  ;;  %v2016_v29 = vmul.f32 %v3468_v39, %v1942_v43 }
 0x1e5   :  { %v1918_v37 = vadd.f32 %v1626_v48, %v1513_v38  ;;  %v1628_v56 = vpop.f32.mrb[13].mxu0  ;;  %v2017_v49 = vmul.f32 %v3474_v44, %v1943_v19  ;;  %v1462_v38 = vmul.f32 %v3449_v13, %v3415_v59  ;;  %v3541_v19 = vadd.f32 %v3464_v40, %v1469_v53 }
 0x1e6   :  { %v1919_v21 = vadd.f32 %v1628_v56, %v1514_v16  ;;  %v1510_v16 = vadd.f32 %v3417_v52, %v1454_v9  ;;  %v3544_v48 = vadd.f32 %v3417_v52, %v1455_v34 }
 0x1e7   :  { %v1950_v18 = vmax.f32 %v1918_v37, 0.0  ;;  %v3500_v25 = vadd.f32 %v2017_v49, %v2016_v29  ;;  %v1518_v31 = vadd.f32 %v3421_v57, %v1462_v38  ;;  %v3584_v38 = vrot.slane %v3443_v8, %v3813_v4 }
 0x1e8   :  { %v1951_v12 = vmax.f32 %v1919_v21, 0.0  ;;  %v1632_v23 = vpop.f32.mrb[14].mxu0  ;;  %v3554_v21 = vadd.f32 %v3417_v52, %v1456_v15 }
 0x1e9   :  { %v2024_v33 = vmul.f32 %v3468_v39, %v1950_v18  ;;  %v1926_v0 = vadd.f32 %v1632_v23, %v1521_v61  ;;  %v1634_v63 = vpop.f32.mrb[15].mxu0  ;;  %v3532_v61 = vadd.f32 %v3481_v22, %v1475_v60  ;;  %v3811_v18 = vld [vmem:[#allocation5_spill] sm:$0xff] }
 0x1ea   :  { %v2025_v20 = vmul.f32 %v3474_v44, %v1951_v12  ;;  %v1927_v1 = vadd.f32 %v1634_v63, %v1522_v26  ;;  %v3547_v26 = vadd.f32 %v3464_v40, %v1470_v3  ;;  %v3562_v12 = vrot.slane %v3443_v8, %v3811_v18 }
 0x1eb   :  { %v1958_v32 = vmax.f32 %v1926_v0, 0.0  ;;  %v3572_v63 = vmul.f32 %v3457_v35, %v3415_v59 }
 0x1ec   :  { %v3521_v50 = vadd.f32 %v2025_v20, %v2024_v33  ;;  %v1959_v6 = vmax.f32 %v1927_v1, 0.0  ;;  %v3575_v20 = vadd.f32 %v3481_v22, %v1477_v17 }
 0x1ed   :  { %v2032_v24 = vmul.f32 %v3468_v39, %v1958_v32 }
 0x1ee   :  { %v2033_v43 = vmul.f32 %v3474_v44, %v1959_v6  ;;  %v1638_v45 = vpop.f32.mrb[16].mxu0  ;;  %v3814_v6 = vld [vmem:[#allocation4_spill] sm:$0xff] }
 0x1ef   :  { %v1709_v29 = vpop.f32.mrb[14].mxu1  ;;  %v1934_v56 = vadd.f32 %v1638_v45, %v1529_v47  ;;  %v1640_v49 = vpop.f32.mrb[17].mxu0  ;;  %v3812_v47 = vld [vmem:[#allocation6_spill] sm:$0xff]  ;;  %v3590_v15 = vrot.slane %v3443_v8, %v3814_v6  ;;  %v3596_v45 = vmul.f32 %v3457_v35, %v3425_v30 }
 0x1f0   :  { %v3551_v37 = vadd.f32 %v2033_v43, %v2032_v24  ;;  %v1912_v5 = vadd.f32 %v1709_v29, %v1507_v2  ;;  %v1711_v23 = vpop.f32.mrb[15].mxu1  ;;  %v1935_v9 = vadd.f32 %v1640_v49, %v1530_v55  ;;  %v3568_v0 = vrot.slane %v3443_v8, %v3812_v47 }
 0x1f1   :  { %v1913_v33 = vadd.f32 %v1711_v23, %v1508_v27  ;;  %v1966_v52 = vmax.f32 %v1934_v56, 0.0  ;;  %v3579_v55 = vmul.f32 %v3453_v62, %v3425_v30 }
 0x1f2   :  { %v1944_v2 = vmax.f32 %v1912_v5, 0.0  ;;  %v1967_v60 = vmax.f32 %v1935_v9, 0.0  ;;  %v1798_v11 = vpop.f32.mrb[18].mxu0 }
 0x1f3   :  { %v1945_v13 = vmax.f32 %v1913_v33, 0.0  ;;  %v2040_v27 = vmul.f32 %v3468_v39, %v1966_v52  ;;  %v1914_v1 = vadd.f32 %v1798_v11, %v1509_v36  ;;  %v1800_v59 = vpop.f32.mrb[19].mxu0  ;;  %v3815_v11 = vld [vmem:[#allocation7_spill] sm:$0xff] }
 0x1f4   :  { %v2018_v32 = vmul.f32 %v3562_v12, %v1944_v2  ;;  %v1715_v53 = vpop.f32.mrb[16].mxu1  ;;  %v2041_v34 = vmul.f32 %v3474_v44, %v1967_v60  ;;  %v1915_v3 = vadd.f32 %v1800_v59, %v1510_v16 }
 0x1f5   :  { %v2019_v24 = vmul.f32 %v3568_v0, %v1945_v13  ;;  %v1920_v39 = vadd.f32 %v1715_v53, %v3494_v51  ;;  %v1717_v36 = vpop.f32.mrb[17].mxu1  ;;  %v1946_v43 = vmax.f32 %v1914_v1, 0.0  ;;  %v1534_v51 = vadd.f32 %v3481_v22, %v1478_v7 }
 0x1f6   :  { %v2049_v17 = vadd.f32 %v3500_v25, %v2018_v32  ;;  %v3599_v29 = vadd.f32 %v2041_v34, %v2040_v27  ;;  %v1921_v44 = vadd.f32 %v1717_v36, %v3498_v10  ;;  %v1947_v16 = vmax.f32 %v1915_v3, 0.0  ;;  %v1804_v56 = vpop.f32.mrb[20].mxu0 }
 0x1f7   :  { %v1952_v49 = vmax.f32 %v1920_v39, 0.0  ;;  %v2020_v5 = vmul.f32 %v3584_v38, %v1946_v43  ;;  %v1922_v18 = vadd.f32 %v1804_v56, %v1517_v46  ;;  %v1806_v23 = vpop.f32.mrb[21].mxu0  ;;  %v3609_v13 = vrot.slane %v3443_v8, %v3815_v11 }
 0x1f8   :  { %v2050_v9 = vadd.f32 %v2049_v17, %v2019_v24  ;;  %v1953_v33 = vmax.f32 %v1921_v44, 0.0  ;;  %v2021_v30 = vmul.f32 %v3590_v15, %v1947_v16  ;;  %v1923_v52 = vadd.f32 %v1806_v23, %v1518_v31 }
 0x1f9   :  { %v1721_v47 = vpop.f32.mrb[18].mxu1  ;;  %v2026_v25 = vmul.f32 %v3562_v12, %v1952_v49  ;;  %v1954_v60 = vmax.f32 %v1922_v18, 0.0  ;;  %v3624_v56 = vrot.slane %v3443_v8, %v2995_v54 }
 0x1fa   :  { %v1928_v2 = vadd.f32 %v1721_v47, %v3503_v14  ;;  %v1723_v10 = vpop.f32.mrb[19].mxu1  ;;  %v2027_v46 = vmul.f32 %v3568_v0, %v1953_v33  ;;  %v2051_v27 = vadd.f32 %v2050_v9, %v2020_v5  ;;  %v1955_v1 = vmax.f32 %v1923_v52, 0.0  ;;  %v1810_v4 = vpop.f32.mrb[22].mxu0 }
 0x1fb   :  { %v1929_v7 = vadd.f32 %v1723_v10, %v3528_v42  ;;  %v2058_v59 = vadd.f32 %v3521_v50, %v2026_v25  ;;  %v2028_v32 = vmul.f32 %v3584_v38, %v1954_v60  ;;  %v1930_v14 = vadd.f32 %v1810_v4, %v3541_v19  ;;  %v1812_v53 = vpop.f32.mrb[23].mxu0 }
 0x1fc   :  { %v1960_v31 = vmax.f32 %v1928_v2, 0.0  ;;  %v2052_v3 = vadd.f32 %v2051_v27, %v2021_v30  ;;  %v2029_v24 = vmul.f32 %v3590_v15, %v1955_v1  ;;  %v1931_v39 = vadd.f32 %v1812_v53, %v3547_v26 }
 0x1fd   :  { %v1961_v34 = vmax.f32 %v1929_v7, 0.0  ;;  %v1727_v6 = vpop.f32.mrb[20].mxu1  ;;  %v2059_v36 = vadd.f32 %v2058_v59, %v2027_v46  ;;  %v1962_v50 = vmax.f32 %v1930_v14, 0.0 }
 0x1fe   :  { %v2034_v42 = vmul.f32 %v3562_v12, %v1960_v31  ;;  %v1936_v43 = vadd.f32 %v1727_v6, %v3532_v61  ;;  %v1729_v17 = vpop.f32.mrb[21].mxu1  ;;  %v1963_v19 = vmax.f32 %v1931_v39, 0.0  ;;  %v1816_v49 = vpop.f32.mrb[24].mxu0 }
 0x1ff   :  { %v2035_v44 = vmul.f32 %v3568_v0, %v1961_v34  ;;  %v1937_v16 = vadd.f32 %v1729_v17, %v3537_v41  ;;  %v2060_v18 = vadd.f32 %v2059_v36, %v2028_v32  ;;  %v2036_v23 = vmul.f32 %v3584_v38, %v1962_v50  ;;  %v1818_v9 = vpop.f32.mrb[25].mxu0 }
 0x200   :  { %v2067_v5 = vadd.f32 %v3551_v37, %v2034_v42  ;;  %v1968_v26 = vmax.f32 %v1936_v43, 0.0  ;;  %v2037_v47 = vmul.f32 %v3590_v15, %v1963_v19  ;;  %v1938_v30 = vadd.f32 %v1816_v49, %v3575_v20 }
 0x201   :  { %v1969_v61 = vmax.f32 %v1937_v16, 0.0  ;;  %v1887_v33 = vpop.f32.mrb[22].mxu1  ;;  %v1939_v41 = vadd.f32 %v1818_v9, %v1534_v51  ;;  %v2061_v54 = vadd.f32 %v2060_v18, %v2029_v24  ;;  %v1519_v20 = vadd.f32 %v3421_v57, %v3558_v28 }
 0x202   :  { %v2068_v52 = vadd.f32 %v2067_v5, %v2035_v44  ;;  %v2042_v25 = vmul.f32 %v3562_v12, %v1968_v26  ;;  %v1916_v8 = vadd.f32 %v1887_v33, %v3544_v48  ;;  %v1889_v2 = vpop.f32.mrb[23].mxu1  ;;  %v1970_v60 = vmax.f32 %v1938_v30, 0.0 }
 0x203   :  { %v2043_v37 = vmul.f32 %v3568_v0, %v1969_v61  ;;  %v1917_v10 = vadd.f32 %v1889_v2, %v3554_v21  ;;  %v1971_v11 = vmax.f32 %v1939_v41, 0.0  ;;  %v1520_v0 = vadd.f32 %v3421_v57, %v3572_v63  ;;  %v2084_v41 = vld [vmem:[%s3742_s14] sm:$0xff] }
 0x204   :  { %v2076_v46 = vadd.f32 %v3599_v29, %v2042_v25  ;;  %v2069_v27 = vadd.f32 %v2068_v52, %v2036_v23  ;;  %v1948_v7 = vmax.f32 %v1916_v8, 0.0  ;;  %v2044_v12 = vmul.f32 %v3584_v38, %v1970_v60  ;;  %2458 = vmatprep.mubr.msk.f32.mxu0 %vm1541_vm1, %v2084_v41  ;;  %v2085_v60 = vld [vmem:[%s3742_s14 + $0x8] sm:$0xff] }
 0x205   :  { %v1949_v51 = vmax.f32 %v1917_v10, 0.0  ;;  %v1893_v1 = vpop.f32.mrb[24].mxu1  ;;  %v2045_v48 = vmul.f32 %v3590_v15, %v1971_v11  ;;  %v1479_v28 = vmul.f32 %v3453_v62, %v3434_v58  ;;  %v1527_v15 = vadd.f32 %v3464_v40, %v3579_v55  ;;  %v2086_v11 = vld [vmem:[%s3742_s14 + $0x10] sm:$0xff] }
 0x206   :  { %v2077_v4 = vadd.f32 %v2076_v46, %v2043_v37  ;;  %v2022_v21 = vmul.f32 %v3609_v13, %v1948_v7  ;;  %v2070_v59 = vadd.f32 %v2069_v27, %v2037_v47  ;;  %v1924_v31 = vadd.f32 %v1893_v1, %v1519_v20  ;;  %v1895_v29 = vpop.f32.mrb[25].mxu1  ;;  %v2087_v46 = vld [vmem:[%s3742_s14 + $0x18] sm:$0xff]  ;;  %v2189_v27 = vld [vmem:[%s3744_s16] sm:$0xff]  ;;  %v2190_v7 = vld [vmem:[%s3744_s16 + $0x8] sm:$0xff] }
 0x207   :  { %v2023_v32 = vmul.f32 %v3624_v56, %v1949_v51  ;;  %v1925_v14 = vadd.f32 %v1895_v29, %v1520_v0  ;;  %v1528_v63 = vadd.f32 %v3464_v40, %v3596_v45  ;;  %v1480_v24 = vmul.f32 %v3457_v35, %v3434_v58  ;;  %v2191_v20 = vld [vmem:[%s3744_s16 + $0x10] sm:$0xff]  ;;  %v2192_v51 = vld [vmem:[%s3744_s16 + $0x18] sm:$0xff]  ;;  %v2089_v1 = vld [vmem:[%s3746_s15 + $0x8] sm:$0xff] }
 0x208   :  { %v2078_v53 = vadd.f32 %v2077_v4, %v2044_v12  ;;  %v1956_v38 = vmax.f32 %v1924_v31, 0.0  ;;  %v2053_v34 = vadd.f32 %v2052_v3, %v2022_v21  ;;  %v1535_v55 = vadd.f32 %v3481_v22, %v1479_v28  ;;  %v2300_v12 = vld [vmem:[%s3745_s17] sm:$0xff]  ;;  %v2091_v31 = vld [vmem:[%s3746_s15 + $0x18] sm:$0xff] }
 0x209   :  { %v1957_v6 = vmax.f32 %v1925_v14, 0.0  ;;  %v1899_v57 = vpop.f32.mrb[26].mxu1  ;;  %v1536_v40 = vadd.f32 %v3481_v22, %v1480_v24  ;;  %2482 = vmatprep.mubr.msk.f32.mxu1 %vm1541_vm1, %v2300_v12  ;;  %v2301_v24 = vld [vmem:[%s3745_s17 + $0x8] sm:$0xff] }
 0x20a   :  { %v2030_v39 = vmul.f32 %v3609_v13, %v1956_v38  ;;  %v2079_v36 = vadd.f32 %v2078_v53, %v2045_v48  ;;  %v1932_v42 = vadd.f32 %v1899_v57, %v1527_v15  ;;  %v1901_v43 = vpop.f32.mrb[27].mxu1  ;;  %v2054_v62 = vadd.f32 %v2053_v34, %v2023_v32  ;;  %v2088_v48 = vld [vmem:[%s3746_s15] sm:$0xff]  ;;  %v2090_v32 = vld [vmem:[%s3746_s15 + $0x10] sm:$0xff] }
 0x20b   :  { %v2031_v17 = vmul.f32 %v3624_v56, %v1957_v6  ;;  %v1933_v50 = vadd.f32 %v1901_v43, %v1528_v63 }
 0x20c   :  { %v1964_v44 = vmax.f32 %v1932_v42, 0.0  ;;  %2055 = vadd.xlane.f32.xlu0 %v2054_v62  ;;  %v2062_v3 = vadd.f32 %v2061_v54, %v2030_v39  ;;  %v2303_v39 = vld [vmem:[%s3747_s18 + $0x8] sm:$0xff] }
 0x20d   :  { %v1965_v16 = vmax.f32 %v1933_v50, 0.0  ;;  %v1905_v19 = vpop.f32.mrb[28].mxu1 }
 0x20e   :  { %v2038_v58 = vmul.f32 %v3609_v13, %v1964_v44  ;;  %v1940_v35 = vadd.f32 %v1905_v19, %v1535_v55  ;;  %v1907_v45 = vpop.f32.mrb[29].mxu1  ;;  %v2063_v49 = vadd.f32 %v2062_v3, %v2031_v17 }
 0x20f   :  { %v2039_v5 = vmul.f32 %v3624_v56, %v1965_v16  ;;  %v1941_v26 = vadd.f32 %v1907_v45, %v1536_v40 }
 0x210   :  { %v1972_v18 = vmax.f32 %v1940_v35, 0.0  ;;  %2064 = vadd.xlane.f32.xlu1 %v2063_v49  ;;  %v2071_v23 = vadd.f32 %v2070_v59, %v2038_v58 }
 0x211   :  { %v1973_v9 = vmax.f32 %v1941_v26, 0.0 }
 0x212   :  { %v2046_v61 = vmul.f32 %v3609_v13, %v1972_v18  ;;  %v2072_v33 = vadd.f32 %v2071_v23, %v2039_v5  ;;  %v2193_v13 = vld [vmem:[%s3743_s2] sm:$0xff] }
 0x213   :  { %v2047_v47 = vmul.f32 %v3624_v56, %v1973_v9  ;;  %v2194_v56 = vld [vmem:[%s3743_s2 + $0x8] sm:$0xff] }
 0x214   :  { %2073 = vadd.xlane.f32.xlu0 %v2072_v33  ;;  %v2080_v30 = vadd.f32 %v2079_v36, %v2046_v61  ;;  %v2573_v10 = vpack.c.bf16 %v2194_v56, %v2193_v13  ;;  %v2302_v36 = vld [vmem:[%s3747_s18] sm:$0xff] }
 0x216   :  { %v2081_v22 = vadd.f32 %v2080_v30, %v2047_v47 }
 0x218   :  { %2082 = vadd.xlane.f32.xlu0 %v2081_v22 }
 0x299   :  { %v2056_v52 = vpop.xlane.xlu0 %2055 }
 0x29d   :  { %v2065_v25 = vpop.xlane.xlu1 %2064 }
 0x29e   :  { %v2565_v54 = vpack.c.bf16 %v2065_v25, %v2056_v52 }
 0x2a0   :  { %2566 = vmatprep.subr.bf16.mxu0 %v2565_v54 }
 0x2a1   :  { %2568 = vmatpush3.bf16.msra.mxu0 %v2565_v54  ;;  %v2074_v8 = vpop.xlane.xlu0 %2073 }
 0x2a5   :  { %v2083_v2 = vpop.xlane.xlu0 %2082 }
 0x2a6   :  { %v2569_v37 = vpack.c.bf16 %v2083_v2, %v2074_v8 }
 0x2a8   :  { %2570 = vmatprep.subr.bf16.mxu0 %v2569_v37 }
 0x2a9   :  { %2572 = vmatpush3.bf16.msra.mxu0 %v2569_v37 }
 0x2aa   :  { %2574 = vmatprep.subr.bf16.mxu0 %v2573_v10 }
 0x2ac   :  { %2459 = vmatmul.mubr.msk.f32.vlgmr.msra.gmra.mrb[26].mxu0 %vm1541_vm1, %v2085_v60 }
 0x2ad   :  { %2461 = vmatprep.mubr.msk.f32.mxu0 %vm1541_vm1, %v2086_v11  ;;  %2576 = vmatpush3.bf16.msra.mxu0 %v2573_v10 }
 0x2b0   :  { %2462 = vmatmul.mubr.msk.f32.gmra.mrb[28].mxu0 %vm1541_vm1, %v2087_v46 }
 0x2b1   :  { %2468 = vmatprep.mubr.msk.f32.mxu0 %vm121_vm0, %v2189_v27 }
 0x2b4   :  { %2469 = vmatmul.mubr.msk.f32.vlgmr.msra.gmra.mrb[26].mxu0 %vm121_vm0, %v2190_v7 }
 0x2b5   :  { %2471 = vmatprep.mubr.msk.f32.mxu0 %vm121_vm0, %v2191_v20 }
 0x2b8   :  { %2472 = vmatmul.mubr.msk.f32.gmra.mrb[28].mxu0 %vm121_vm0, %v2192_v51 }
 0x387   :  { %v2470_v0 = vpop.f32.mrb[26].mxu0 }
 0x388   :  { %v2585_v4 = vadd.f32 %v2470_v0, %v2089_v1  ;;  %v2273_v21 = vpop.f32.mrb[27].mxu0 }
 0x389   :  { %v2586_v59 = vadd.f32 %v2273_v21, %v2088_v48 }
 0x38a   :  { %v2297_v29 = vmax.f32 %v2585_v4, 0.0 }
 0x38b   :  { %v2296_v14 = vmax.f32 %v2586_v59, 0.0  ;;  %v2473_v28 = vpop.f32.mrb[28].mxu0 }
 0x38c   :  { %v2587_v53 = vadd.f32 %v2473_v28, %v2091_v31  ;;  %v2283_v38 = vpop.f32.mrb[29].mxu0 }
 0x38d   :  { %v2577_v15 = vpack.c.bf16 %v2297_v29, %v2296_v14  ;;  %v2588_v34 = vadd.f32 %v2283_v38, %v2090_v32 }
 0x38e   :  { %v2299_v6 = vmax.f32 %v2587_v53, 0.0 }
 0x38f   :  { %v2298_v57 = vmax.f32 %v2588_v34, 0.0  ;;  %2578 = vmatprep.subr.bf16.mxu1 %v2577_v15 }
 0x390   :  { %2580 = vmatpush3.bf16.msra.mxu1 %v2577_v15 }
 0x391   :  { %v2581_v63 = vpack.c.bf16 %v2299_v6, %v2298_v57 }
 0x393   :  { %2582 = vmatprep.subr.bf16.mxu1 %v2581_v63 }
 0x394   :  { %2584 = vmatpush3.bf16.msra.mxu1 %v2581_v63 }
 0x397   :  { %2483 = vmatmul.mubr.msk.f32.vlgmr.msra.gmra.mrb[30].mxu1 %vm1541_vm1, %v2301_v24 }
 0x46a   :  { %v2484_v42 = vpop.f32.mrb[30].mxu1 }
 0x46b   :  { %v2382_v43 = vadd.f32 %v2484_v42, %v2303_v39  ;;  %v2376_v62 = vpop.f32.mrb[31].mxu1 }
 0x46c   :  { %v2377_v17 = vadd.f32 %v2376_v62, %v2302_v36 }
 0x46d   :  { %2387 = vst.msk [vmem:[%s3748_s19 + $0x8] sm:$0xff] %vm2385_vm2, %v2382_v43 }
 0x46e   :  { %2386 = vst.msk [vmem:[%s3748_s19] sm:$0xff] %vm2385_vm2, %v2377_v17 }

</bundles_post_ra>
